<compile_context>
chip_gen: v7x
topology: tpu7x:2x2x1
jax: 0.10.0
libtpu: 0.0.40
codegen_flags: <defaults>
</compile_context>

<pallas_src>
import functools

import jax
import jax.numpy as jnp
from jax.experimental import pallas as pl
from jax.experimental.pallas import tpu as pltpu

LATENT_DIMS = 3
HIDDEN_DIMS = (256, 64)
INPUT_DIMS = 4
OUT_PAD = 8          # 2 * latent_dims (=6) padded up to a full sublane group
MAX_TILE_M = 4096    # lanes per grid step; ~5 MiB/step incl. double buffers


def _round_up(x, m):
    return ((x + m - 1) // m) * m


def _encoder_kernel(x_ref, w1_ref, b1_ref, w2_ref, b2_ref, w3_ref, b3_ref,
                    out_ref):
    # Lane-dense transposed layout: flattened batch rows live on the lane axis.
    x = x_ref[...]                                  # (INPUT_DIMS, TM) f32
    w1 = w1_ref[...]                                # (H1, INPUT_DIMS) f32

    # ---- Layer 1: Linear(4 -> 256) + ReLU on the VPU (K=4 wastes the MXU).
    # Balanced tree: 3 dependency levels so the 4 VALU slots can co-issue.
    t01 = w1[:, 0:1] * x[0:1, :] + w1[:, 1:2] * x[1:2, :]
    t23 = w1[:, 2:3] * x[2:3, :] + w1[:, 3:4] * x[3:4, :]
    h1 = jnp.maximum(t01 + t23 + b1_ref[...], 0.0)  # (H1, TM) f32
    h1 = h1.astype(w2_ref.dtype)                    # bf16 feed when mxu_bf16

    # ---- Layer 2: Linear(256 -> 64) + ReLU on the MXU, f32 accumulate.
    h2 = jnp.dot(w2_ref[...], h1, preferred_element_type=jnp.float32)
    h2 = jnp.maximum(h2 + b2_ref[...], 0.0)         # (H2, TM) f32
    h2 = h2.astype(w3_ref.dtype)

    # ---- Layer 3: Linear(64 -> 8) (rows 6..7 are zero padding), f32 accumulate.
    h3 = jnp.dot(w3_ref[...], h2, preferred_element_type=jnp.float32)
    h3 = h3 + b3_ref[...]                           # (OUT_PAD, TM) f32

    # rows [0,3): q_means (identity); rows [3,6): softplus (torch threshold=20);
    # rows [6,8): padding, sliced off by the wrapper.
    row = jax.lax.broadcasted_iota(jnp.int32, h3.shape, 0)
    safe = jnp.minimum(h3, 20.0)                    # keep exp finite on both branches
    softplus = jnp.where(h3 > 20.0, h3, jnp.log1p(jnp.exp(safe)))
    out_ref[...] = jnp.where(row < LATENT_DIMS, h3, softplus).astype(out_ref.dtype)


@functools.partial(jax.jit, static_argnames=("tile_m", "mxu_bf16"))
def spe10_encoder(y, params, *, tile_m=None, mxu_bf16=True):
    """y: (..., input_dims) f32. Returns (q_means, q_stds), each (..., latent_dims)."""
    w1, b1, w2, b2, w3, b3 = params                 # torch layout: W is (fan_out, fan_in)
    lead_shape = y.shape[:-1]
    in_dims = y.shape[-1]
    assert in_dims == INPUT_DIMS
    M = 1
    for d in lead_shape:
        M *= d
    M = max(M, 1)

    h1_dim, h2_dim = HIDDEN_DIMS
    out2 = 2 * LATENT_DIMS

    # Tile choice: lane-dense (multiple of 128), capped at MAX_TILE_M lanes, and
    # aiming for an EVEN number of >=2 grid steps so v7x's two TensorCores both
    # get work and the BlockSpec pipeline has >=2 stages.
    if tile_m is None:
        m128 = _round_up(M, 128)
        if m128 <= 128:
            tile_m = 128
        else:
            steps = max(2, -(-m128 // MAX_TILE_M))
            steps += steps % 2                      # even step count
            tile_m = _round_up(-(-m128 // steps), 128)
    tile_m = max(128, _round_up(tile_m, 128))
    M_pad = _round_up(M, tile_m)
    grid = (M_pad // tile_m,)

    # Transpose to lane-dense layout (rows -> lanes), then pad the lane axis.
    xT = y.reshape(M, in_dims).T                    # (INPUT_DIMS, M)
    if M_pad != M:
        xT = jnp.pad(xT, ((0, 0), (0, M_pad - M)))

    b1c = b1.reshape(h1_dim, 1)
    b2c = b2.reshape(h2_dim, 1)
    # Pad layer 3 to OUT_PAD output rows so the output tile is fully dense.
    w3p = jnp.zeros((OUT_PAD, h2_dim), w3.dtype).at[:out2].set(w3)
    b3p = jnp.zeros((OUT_PAD, 1), b3.dtype).at[:out2, 0].set(b3)

    if mxu_bf16:
        w2m = w2.astype(jnp.bfloat16)
        w3m = w3p.astype(jnp.bfloat16)
    else:
        w2m = w2
        w3m = w3p

    full = lambda r, c: pl.BlockSpec((r, c), lambda i: (0, 0))

    cost = pl.CostEstimate(
        flops=2 * M_pad * (INPUT_DIMS * h1_dim + h1_dim * h2_dim + h2_dim * OUT_PAD),
        transcendentals=2 * M_pad * OUT_PAD,
        bytes_accessed=(4 * M_pad * (INPUT_DIMS + OUT_PAD)
                        + w1.size * w1.dtype.itemsize
                        + w2m.size * w2m.dtype.itemsize
                        + w3m.size * w3m.dtype.itemsize
                        + 4 * (h1_dim + h2_dim + OUT_PAD)),
    )

    out = pl.pallas_call(
        _encoder_kernel,
        out_shape=jax.ShapeDtypeStruct((OUT_PAD, M_pad), jnp.float32),
        grid_spec=pltpu.PrefetchScalarGridSpec(
            num_scalar_prefetch=0,
            grid=grid,
            in_specs=[
                pl.BlockSpec((INPUT_DIMS, tile_m), lambda i: (0, i)),  # xT tiles
                full(h1_dim, INPUT_DIMS),   # w1 (256, 4) f32 (VPU layer)
                full(h1_dim, 1),            # b1
                full(h2_dim, h1_dim),       # w2 (64, 256) bf16/f32
                full(h2_dim, 1),            # b2
                full(OUT_PAD, h2_dim),      # w3 padded (8, 64) bf16/f32
                full(OUT_PAD, 1),           # b3 padded
            ],
            out_specs=pl.BlockSpec((OUT_PAD, tile_m), lambda i: (0, i)),
        ),
        compiler_params=pltpu.CompilerParams(
            dimension_semantics=("parallel",),
            vmem_limit_bytes=32 * 1024 * 1024),
        cost_estimate=cost,
    )(xT, w1, b1c, w2m, b2c, w3m, b3p)

    # Single output transpose, then split columns (means | softplus rows).
    outT = out[:out2, :M].T                         # (M, 6)
    q_means = outT[:, :LATENT_DIMS].reshape(*lead_shape, LATENT_DIMS)
    q_stds = outT[:, LATENT_DIMS:].reshape(*lead_shape, LATENT_DIMS)
    return q_means, q_stds


def init_params(key):
    """nn.Linear default init: uniform(-1/sqrt(fan_in), +1/sqrt(fan_in)); torch layout."""
    layer_dims = [INPUT_DIMS, *HIDDEN_DIMS, 2 * LATENT_DIMS]
    params = []
    for i in range(len(layer_dims) - 1):
        fan_in, fan_out = layer_dims[i], layer_dims[i + 1]
        key, kw, kb = jax.random.split(key, 3)
        bound = 1.0 / (fan_in ** 0.5)
        w = jax.random.uniform(kw, (fan_out, fan_in), jnp.float32, -bound, bound)
        b = jax.random.uniform(kb, (fan_out,), jnp.float32, -bound, bound)
        params.extend([w, b])
    return tuple(params)


def _reference(y, params, mxu_bf16=False):
    w1, b1, w2, b2, w3, b3 = params
    prec = jax.lax.Precision.HIGHEST
    h = jnp.maximum(jnp.dot(y, w1.T, precision=prec) + b1, 0.0)
    if mxu_bf16:
        h = h.astype(jnp.bfloat16)
        w2 = w2.astype(jnp.bfloat16)
        w3 = w3.astype(jnp.bfloat16)
        h = jnp.maximum(
            jnp.dot(h, w2.T, preferred_element_type=jnp.float32) + b2, 0.0)
        h = h.astype(jnp.bfloat16)
        h = jnp.dot(h, w3.T, preferred_element_type=jnp.float32) + b3
    else:
        h = jnp.maximum(jnp.dot(h, w2.T, precision=prec) + b2, 0.0)
        h = jnp.dot(h, w3.T, precision=prec) + b3
    means = h[..., :LATENT_DIMS]
    pre = h[..., LATENT_DIMS:]
    stds = jnp.where(pre > 20.0, pre, jnp.log1p(jnp.exp(jnp.minimum(pre, 20.0))))
    return means, stds


if __name__ == "__main__":
    key = jax.random.PRNGKey(0)
    key, kx = jax.random.split(key)
    params = init_params(key)

    batch, seq = 2, 8
    y = jax.random.normal(kx, (batch, seq, INPUT_DIMS), jnp.float32)

    # 1) Strict f32 path: matches the PyTorch module to tight tolerance.
    m32, s32 = spe10_encoder(y, params, mxu_bf16=False)
    jax.block_until_ready((m32, s32))
    rm, rs = _reference(y, params)
    assert m32.shape == (batch, seq, LATENT_DIMS)
    assert s32.shape == (batch, seq, LATENT_DIMS)
    assert jnp.allclose(m32, rm, atol=1e-5, rtol=1e-5)
    assert jnp.allclose(s32, rs, atol=1e-5, rtol=1e-5)

    # 2) Default bf16-MXU fast path: tight vs a bf16-matched reference,
    #    loose sanity vs the pure-f32 reference.
    mbf, sbf = spe10_encoder(y, params)
    jax.block_until_ready((mbf, sbf))
    rmb, rsb = _reference(y, params, mxu_bf16=True)
    assert jnp.allclose(mbf, rmb, atol=5e-3, rtol=5e-3)
    assert jnp.allclose(sbf, rsb, atol=5e-3, rtol=5e-3)
    assert jnp.allclose(mbf, rm, atol=5e-2, rtol=5e-2)
    assert jnp.allclose(sbf, rs, atol=5e-2, rtol=5e-2)
    assert bool(jnp.all(sbf >= 0.0))

    # 3) Larger, non-tile-multiple shape: exercises row padding + a 2-step grid
    #    (both v7x TensorCores get one step each).
    key, kx2 = jax.random.split(key)
    y_big = jax.random.normal(kx2, (5, 1000, INPUT_DIMS), jnp.float32)
    m_big, s_big = spe10_encoder(y_big, params)
    jax.block_until_ready((m_big, s_big))
    rmb2, rsb2 = _reference(y_big, params, mxu_bf16=True)
    assert m_big.shape == (5, 1000, LATENT_DIMS)
    assert jnp.allclose(m_big, rmb2, atol=5e-3, rtol=5e-3)
    assert jnp.allclose(s_big, rsb2, atol=5e-3, rtol=5e-3)

    print("KERNEL_OK")
</pallas_src>

<mosaic_0001>
module attributes {stable_mosaic.version = 11 : i64} {
  func.func @_encoder_kernel(%arg0: i32, %arg1: memref<4x128xf32, #tpu.memory_space<vmem>>, %arg2: memref<256x4xf32, #tpu.memory_space<vmem>>, %arg3: memref<256x1xf32, #tpu.memory_space<vmem>>, %arg4: memref<64x256xf32, #tpu.memory_space<vmem>>, %arg5: memref<64x1xf32, #tpu.memory_space<vmem>>, %arg6: memref<8x64xf32, #tpu.memory_space<vmem>>, %arg7: memref<8x1xf32, #tpu.memory_space<vmem>>, %arg8: memref<8x128xf32, #tpu.memory_space<vmem>>) attributes {dimension_semantics = [#tpu.dimension_semantics<parallel>], iteration_bounds = array<i64: 1>, scalar_prefetch = 0 : i64, scratch_operands = 0 : i64, tpu.core_type = #tpu.core_type<tc>, window_params = [{transform_indices = @transform_0, window_bounds = array<i64: 4, 128>}, {pipeline_mode = #tpu.pipeline_mode<synchronous>, transform_indices = @transform_1, window_bounds = array<i64: 256, 4>}, {pipeline_mode = #tpu.pipeline_mode<synchronous>, transform_indices = @transform_2, window_bounds = array<i64: 256, 1>}, {pipeline_mode = #tpu.pipeline_mode<synchronous>, transform_indices = @transform_3, window_bounds = array<i64: 64, 256>}, {pipeline_mode = #tpu.pipeline_mode<synchronous>, transform_indices = @transform_4, window_bounds = array<i64: 64, 1>}, {pipeline_mode = #tpu.pipeline_mode<synchronous>, transform_indices = @transform_5, window_bounds = array<i64: 8, 64>}, {pipeline_mode = #tpu.pipeline_mode<synchronous>, transform_indices = @transform_6, window_bounds = array<i64: 8, 1>}, {transform_indices = @transform_7, window_bounds = array<i64: 8, 128>}]} {
    %c0 = arith.constant 0 : index
    %c0_0 = arith.constant 0 : index
    %0 = vector.load %arg1[%c0, %c0_0] : memref<4x128xf32, #tpu.memory_space<vmem>>, vector<4x128xf32>
    %c0_1 = arith.constant 0 : index
    %c0_2 = arith.constant 0 : index
    %1 = vector.load %arg2[%c0_1, %c0_2] : memref<256x4xf32, #tpu.memory_space<vmem>>, vector<256x4xf32>
    %2 = vector.extract_strided_slice %1 {offsets = [0, 0], sizes = [256, 1], strides = [1, 1]} : vector<256x4xf32> to vector<256x1xf32>
    %3 = vector.extract_strided_slice %0 {offsets = [0, 0], sizes = [1, 128], strides = [1, 1]} : vector<4x128xf32> to vector<1x128xf32>
    %4 = vector.broadcast %2 : vector<256x1xf32> to vector<256x128xf32>
    %5 = vector.broadcast %3 : vector<1x128xf32> to vector<256x128xf32>
    %6 = arith.mulf %4, %5 : vector<256x128xf32>
    %7 = vector.extract_strided_slice %1 {offsets = [0, 1], sizes = [256, 1], strides = [1, 1]} : vector<256x4xf32> to vector<256x1xf32>
    %8 = vector.extract_strided_slice %0 {offsets = [1, 0], sizes = [1, 128], strides = [1, 1]} : vector<4x128xf32> to vector<1x128xf32>
    %9 = vector.broadcast %7 : vector<256x1xf32> to vector<256x128xf32>
    %10 = vector.broadcast %8 : vector<1x128xf32> to vector<256x128xf32>
    %11 = arith.mulf %9, %10 : vector<256x128xf32>
    %12 = arith.addf %6, %11 : vector<256x128xf32>
    %13 = vector.extract_strided_slice %1 {offsets = [0, 2], sizes = [256, 1], strides = [1, 1]} : vector<256x4xf32> to vector<256x1xf32>
    %14 = vector.extract_strided_slice %0 {offsets = [2, 0], sizes = [1, 128], strides = [1, 1]} : vector<4x128xf32> to vector<1x128xf32>
    %15 = vector.broadcast %13 : vector<256x1xf32> to vector<256x128xf32>
    %16 = vector.broadcast %14 : vector<1x128xf32> to vector<256x128xf32>
    %17 = arith.mulf %15, %16 : vector<256x128xf32>
    %18 = vector.extract_strided_slice %1 {offsets = [0, 3], sizes = [256, 1], strides = [1, 1]} : vector<256x4xf32> to vector<256x1xf32>
    %19 = vector.extract_strided_slice %0 {offsets = [3, 0], sizes = [1, 128], strides = [1, 1]} : vector<4x128xf32> to vector<1x128xf32>
    %20 = vector.broadcast %18 : vector<256x1xf32> to vector<256x128xf32>
    %21 = vector.broadcast %19 : vector<1x128xf32> to vector<256x128xf32>
    %22 = arith.mulf %20, %21 : vector<256x128xf32>
    %23 = arith.addf %17, %22 : vector<256x128xf32>
    %24 = arith.addf %12, %23 : vector<256x128xf32>
    %c0_3 = arith.constant 0 : index
    %c0_4 = arith.constant 0 : index
    %25 = vector.load %arg3[%c0_3, %c0_4] : memref<256x1xf32, #tpu.memory_space<vmem>>, vector<256x1xf32>
    %26 = vector.broadcast %25 : vector<256x1xf32> to vector<256x128xf32>
    %27 = arith.addf %24, %26 : vector<256x128xf32>
    %cst = arith.constant 0.000000e+00 : f32
    %28 = vector.broadcast %cst : f32 to vector<256x128xf32>
    %29 = arith.maximumf %27, %28 : vector<256x128xf32>
    %c0_5 = arith.constant 0 : index
    %c0_6 = arith.constant 0 : index
    %30 = vector.load %arg4[%c0_5, %c0_6] : memref<64x256xf32, #tpu.memory_space<vmem>>, vector<64x256xf32>
    %cst_7 = arith.constant dense<0.000000e+00> : vector<64x128xf32>
    %31 = tpu.matmul %30, %29, %cst_7 {dimension_numbers = #tpu.dot_dimension_numbers<[1], [0], [0], [1], [0, 0, 1, 1], [], []>} : vector<64x256xf32>, vector<256x128xf32>, vector<64x128xf32> -> vector<64x128xf32>
    %c0_8 = arith.constant 0 : index
    %c0_9 = arith.constant 0 : index
    %32 = vector.load %arg5[%c0_8, %c0_9] : memref<64x1xf32, #tpu.memory_space<vmem>>, vector<64x1xf32>
    %33 = vector.broadcast %32 : vector<64x1xf32> to vector<64x128xf32>
    %34 = arith.addf %31, %33 : vector<64x128xf32>
    %cst_10 = arith.constant 0.000000e+00 : f32
    %35 = vector.broadcast %cst_10 : f32 to vector<64x128xf32>
    %36 = arith.maximumf %34, %35 : vector<64x128xf32>
    %c0_11 = arith.constant 0 : index
    %c0_12 = arith.constant 0 : index
    %37 = vector.load %arg6[%c0_11, %c0_12] : memref<8x64xf32, #tpu.memory_space<vmem>>, vector<8x64xf32>
    %cst_13 = arith.constant dense<0.000000e+00> : vector<8x128xf32>
    %38 = tpu.matmul %37, %36, %cst_13 {dimension_numbers = #tpu.dot_dimension_numbers<[1], [0], [0], [1], [0, 0, 1, 1], [], []>} : vector<8x64xf32>, vector<64x128xf32>, vector<8x128xf32> -> vector<8x128xf32>
    %c0_14 = arith.constant 0 : index
    %c0_15 = arith.constant 0 : index
    %39 = vector.load %arg7[%c0_14, %c0_15] : memref<8x1xf32, #tpu.memory_space<vmem>>, vector<8x1xf32>
    %40 = vector.broadcast %39 : vector<8x1xf32> to vector<8x128xf32>
    %41 = arith.addf %38, %40 : vector<8x128xf32>
    %42 = tpu.iota {dimensions = array<i32: 0>} : vector<8x128xi32>
    %cst_16 = arith.constant 2.000000e+01 : f32
    %43 = vector.broadcast %cst_16 : f32 to vector<8x128xf32>
    %44 = arith.minimumf %41, %43 : vector<8x128xf32>
    %cst_17 = arith.constant 2.000000e+01 : f32
    %45 = vector.broadcast %cst_17 : f32 to vector<8x128xf32>
    %46 = arith.cmpf ogt, %41, %45 : vector<8x128xf32>
    %47 = math.exp %44 : vector<8x128xf32>
    %48 = math.log1p %47 : vector<8x128xf32>
    %49 = arith.select %46, %41, %48 : vector<8x128xi1>, vector<8x128xf32>
    %c3_i32 = arith.constant 3 : i32
    %50 = vector.broadcast %c3_i32 : i32 to vector<8x128xi32>
    %51 = arith.cmpi slt, %42, %50 : vector<8x128xi32>
    %52 = arith.select %51, %41, %49 : vector<8x128xi1>, vector<8x128xf32>
    %c0_18 = arith.constant 0 : index
    %c0_19 = arith.constant 0 : index
    %53 = vector.load %arg8[%c0_18, %c0_19] : memref<8x128xf32, #tpu.memory_space<vmem>>, vector<8x128xf32>
    tpu.vector_store %arg8[%c0_18, %c0_19], %52 {strides = array<i32>} : memref<8x128xf32, #tpu.memory_space<vmem>>, vector<8x128xf32>,
    return
  }
  func.func @transform_0(%arg0: i32) -> (i32, i32) {
    %c0_i32 = arith.constant 0 : i32
    %c0_i32_0 = arith.constant 0 : i32
    return %c0_i32, %arg0 : i32, i32
  }
  func.func @transform_1(%arg0: i32) -> (i32, i32) {
    %c0_i32 = arith.constant 0 : i32
    %c0_i32_0 = arith.constant 0 : i32
    %c0_i32_1 = arith.constant 0 : i32
    return %c0_i32, %c0_i32_0 : i32, i32
  }
  func.func @transform_2(%arg0: i32) -> (i32, i32) {
    %c0_i32 = arith.constant 0 : i32
    %c0_i32_0 = arith.constant 0 : i32
    %c0_i32_1 = arith.constant 0 : i32
    return %c0_i32, %c0_i32_0 : i32, i32
  }
  func.func @transform_3(%arg0: i32) -> (i32, i32) {
    %c0_i32 = arith.constant 0 : i32
    %c0_i32_0 = arith.constant 0 : i32
    %c0_i32_1 = arith.constant 0 : i32
    return %c0_i32, %c0_i32_0 : i32, i32
  }
  func.func @transform_4(%arg0: i32) -> (i32, i32) {
    %c0_i32 = arith.constant 0 : i32
    %c0_i32_0 = arith.constant 0 : i32
    %c0_i32_1 = arith.constant 0 : i32
    return %c0_i32, %c0_i32_0 : i32, i32
  }
  func.func @transform_5(%arg0: i32) -> (i32, i32) {
    %c0_i32 = arith.constant 0 : i32
    %c0_i32_0 = arith.constant 0 : i32
    %c0_i32_1 = arith.constant 0 : i32
    return %c0_i32, %c0_i32_0 : i32, i32
  }
  func.func @transform_6(%arg0: i32) -> (i32, i32) {
    %c0_i32 = arith.constant 0 : i32
    %c0_i32_0 = arith.constant 0 : i32
    %c0_i32_1 = arith.constant 0 : i32
    return %c0_i32, %c0_i32_0 : i32, i32
  }
  func.func @transform_7(%arg0: i32) -> (i32, i32) {
    %c0_i32 = arith.constant 0 : i32
    %c0_i32_0 = arith.constant 0 : i32
    return %c0_i32, %arg0 : i32, i32
  }
}

</mosaic_0001>

<bundles_post_ra>
// kernel: spe10_encoder.1
= control target key start
LH: loop header
LB: loop body
LE: loop exit
PB: predicated region body
PF: predicated region fallthrough
CT: control target
= control target key end

     0   :  { %v2591_v0 = vmov 2   ;;  %v2587_v1 = vmov 0   ;;  %v2585_v16 = vmov 1   ;;  %v2589_v19 = vmov 3   ;;  %s2577_s1 = inlined_call_operand.vmem [shape: f32[256,4], index: 1, kind: input, shape index: {}]   ;;  %s2578_s2 = inlined_call_operand.vmem [shape: f32[256,1], index: 2, kind: input, shape index: {}]   ;;  %s2579_s4 = inlined_call_operand.vmem [shape: f32[64,1], index: 4, kind: input, shape index: {}]   ;;  %s2580_s6 = inlined_call_operand.vmem [shape: f32[8,1], index: 6, kind: input, shape index: {}]   ;;  %s2581_s0 = inlined_call_operand.vmem [shape: f32[4,128], index: 0, kind: input, shape index: {}]   ;;  %s2582_s3 = inlined_call_operand.vmem [shape: f32[64,256], index: 3, kind: input, shape index: {}]   ;;  %s2583_s5 = inlined_call_operand.vmem [shape: f32[8,64], index: 5, kind: input, shape index: {}]   ;;  %s2584_s7 = inlined_call_operand.vmem [shape: f32[8,128], index: 7, kind: output, shape index: {}]  }
   0x1   :  { %1519 = vset.pattern.permute.xlu0 %v2591_v0  ;;  %1516 = vset.pattern.permute.xlu1 %v2587_v1  ;;  %v44_v2 = vld [vmem:[%s2577_s1 + $0x88] sm:$0xff]  ;;  %v1637_v3 = vld [vmem:[%s2577_s1 + $0x10] sm:$0xff]  ;;  %v1643_v4 = vld [vmem:[%s2577_s1 + $0x18] sm:$0xff]  ;;  %vm1587_vm0 = vmmov 0   ;;  %vm1283_vm1 = vcmask 523264  }
   0x2   :  { %520 = vperm.xlu0 %1519, %v44_v2   ;;  %71 = vperm.xlu1 %1516, %v1637_v3   ;;  %v1648_v5 = vld [vmem:[%s2577_s1 + $0x8] sm:$0xff]  ;;  %v1667_v8 = vld [vmem:[%s2577_s1 + $0x38] sm:$0xff]  ;;  %v1709_v15 = vld [vmem:[%s2577_s1 + $0x80] sm:$0xff] }
   0x3   :  { %v1655_v6 = vld [vmem:[%s2577_s1 + $0x28] sm:$0xff]  ;;  %v1686_v11 = vld [vmem:[%s2577_s1 + $0x58] sm:$0xff]  ;;  %v1716_v17 = vld [vmem:[%s2577_s1] sm:$0xff] }
   0x4   :  { %v1660_v7 = vld [vmem:[%s2577_s1 + $0xa8] sm:$0xff]  ;;  %v42_v14 = vld [vmem:[%s2577_s1 + $0x78] sm:$0xff]  ;;  %v1730_v20 = vld [vmem:[%s2577_s1 + $0xa0] sm:$0xff] }
   0x5   :  { %v1674_v9 = vld [vmem:[%s2577_s1 + $0x48] sm:$0xff]  ;;  %v46_v18 = vld [vmem:[%s2577_s1 + $0x98] sm:$0xff]  ;;  %v1737_v21 = vld [vmem:[%s2577_s1 + $0x20] sm:$0xff] }
   0x6   :  { %76 = vperm.xlu1 %1516, %v1643_v4   ;;  %456 = vperm.xlu0 %1519, %v1648_v5   ;;  %v1679_v10 = vld [vmem:[%s2577_s1 + $0xc8] sm:$0xff]  ;;  %v1743_v22 = vld [vmem:[%s2577_s1 + $0xb8] sm:$0xff]  ;;  %v1754_v23 = vld [vmem:[%s2577_s1 + $0xc0] sm:$0xff] }
   0x7   :  { %v1693_v12 = vld [vmem:[%s2577_s1 + $0x68] sm:$0xff]  ;;  %v1762_v24 = vld [vmem:[%s2577_s1 + $0x40] sm:$0xff]  ;;  %v1769_v25 = vld [vmem:[%s2577_s1 + $0xd8] sm:$0xff] }
   0x8   :  { %2606 = vst [vmem:[#allocation2_spill] sm:$0xff] %v1693_v12  ;;  %v1698_v13 = vld [vmem:[%s2577_s1 + $0xe8] sm:$0xff]  ;;  %v1777_v26 = vld [vmem:[%s2577_s1 + $0x90] sm:$0xff]  ;;  %v1782_v27 = vld [vmem:[%s2577_s1 + $0xe0] sm:$0xff] }
   0x9   :  { %2607 = vst [vmem:[#allocation3_spill] sm:$0xff] %v1782_v27  ;;  %v1790_v28 = vld [vmem:[%s2577_s1 + $0x60] sm:$0xff]  ;;  %v1798_v29 = vld [vmem:[%s2577_s1 + $0xf8] sm:$0xff]  ;;  %v1811_v30 = vld [vmem:[%s2577_s1 + $0xb0] sm:$0xff] }
   0xa   :  { %86 = vperm.xlu1 %1516, %v1655_v6   ;;  %536 = vperm.xlu0 %1519, %v1660_v7   ;;  %2608 = vst [vmem:[#allocation4_spill] sm:$0xff] %v1790_v28  ;;  %2609 = vst [vmem:[#allocation5_spill] sm:$0xff] %v1798_v29  ;;  %v1818_v31 = vld [vmem:[%s2577_s1 + $0x30] sm:$0xff]  ;;  %v859_v34 = vld [vmem:[%s2578_s2 + $0x80] sm:$0xff] }
   0xb   :  { %v1825_v32 = vld [vmem:[%s2577_s1 + $0xd0] sm:$0xff]  ;;  %v843_v36 = vld [vmem:[%s2578_s2] sm:$0xff]  ;;  %v844_v38 = vld [vmem:[%s2578_s2 + $0x8] sm:$0xff] }
   0xc   :  { %v1833_v33 = vld [vmem:[%s2577_s1 + $0x50] sm:$0xff]  ;;  %v860_v60 = vld [vmem:[%s2578_s2 + $0x88] sm:$0xff]  ;;  %v862_v62 = vld [vmem:[%s2578_s2 + $0x98] sm:$0xff] }
   0xd   :  { %v1843_v35 = vld [vmem:[%s2577_s1 + $0xf0] sm:$0xff] }
   0xe   :  { %96 = vperm.xlu1 %1516, %v1667_v8   ;;  %472 = vperm.xlu0 %1519, %v1655_v6   ;;  %2610 = vst [vmem:[#allocation6_spill] sm:$0xff] %v1843_v35  ;;  %v1852_v37 = vld [vmem:[%s2577_s1 + $0x70] sm:$0xff] }
   0xf   :  { %2611 = vst [vmem:[#allocation7_spill] sm:$0xff] %v1852_v37 }
  0x12   :  { %106 = vperm.xlu1 %1516, %v1674_v9   ;;  %552 = vperm.xlu0 %1519, %v1679_v10  }
  0x16   :  { %116 = vperm.xlu1 %1516, %v1686_v11   ;;  %488 = vperm.xlu0 %1519, %v1674_v9  }
  0x1a   :  { %126 = vperm.xlu1 %1516, %v1693_v12   ;;  %568 = vperm.xlu0 %1519, %v1698_v13  }
  0x1e   :  { %136 = vperm.xlu1 %1516, %v42_v14   ;;  %504 = vperm.xlu0 %1519, %v1693_v12  }
  0x22   :  { %146 = vperm.xlu1 %1516, %v44_v2   ;;  %1565 = vset.pattern.permute.xlu0 %v2585_v16 }
  0x23   :  { %320 = vperm.xlu0 %1565, %v1709_v15  }
  0x26   :  { %1517 = vset.pattern.permute.xlu1 %v2585_v16 }
  0x27   :  { %324 = vperm.xlu1 %1517, %v44_v2   ;;  %256 = vperm.xlu0 %1565, %v1716_v17  }
  0x2b   :  { %1518 = vset.pattern.permute.xlu1 %v2591_v0  ;;  %332 = vperm.xlu0 %1565, %v46_v18  }
  0x2c   :  { %516 = vperm.xlu1 %1518, %v1709_v15  }
  0x2f   :  { %268 = vperm.xlu0 %1565, %v1643_v4  }
  0x30   :  { %1520 = vset.pattern.permute.xlu1 %v2589_v19 }
  0x31   :  { %680 = vperm.xlu1 %1520, %v1709_v15  }
  0x33   :  { %336 = vperm.xlu0 %1565, %v1730_v20  }
  0x35   :  { %684 = vperm.xlu1 %1520, %v44_v2  }
  0x37   :  { %272 = vperm.xlu0 %1565, %v1737_v21  }
  0x39   :  { %1521 = vset.pattern.permute.xlu1 %v2585_v16 }
  0x3a   :  { %260 = vperm.xlu1 %1521, %v1648_v5  }
  0x3b   :  { %348 = vperm.xlu0 %1565, %v1743_v22  }
  0x3e   :  { %1522 = vset.pattern.permute.xlu1 %v2591_v0 }
  0x3f   :  { %284 = vperm.xlu0 %1565, %v1667_v8   ;;  %452 = vperm.xlu1 %1522, %v1716_v17  }
  0x43   :  { %352 = vperm.xlu0 %1565, %v1754_v23   ;;  %1523 = vset.pattern.permute.xlu1 %v2589_v19 }
  0x44   :  { %616 = vperm.xlu1 %1523, %v1716_v17  }
  0x47   :  { %288 = vperm.xlu0 %1565, %v1762_v24  }
  0x48   :  { %620 = vperm.xlu1 %1523, %v1648_v5  }
  0x4b   :  { %364 = vperm.xlu0 %1565, %v1769_v25  }
  0x4c   :  { %1524 = vset.pattern.permute.xlu1 %v2587_v1 }
  0x4d   :  { %156 = vperm.xlu1 %1524, %v46_v18  }
  0x4f   :  { %300 = vperm.xlu0 %1565, %v1686_v11  }
  0x51   :  { %1525 = vset.pattern.permute.xlu1 %v2585_v16 }
  0x52   :  { %328 = vperm.xlu1 %1525, %v1777_v26  }
  0x53   :  { %368 = vperm.xlu0 %1565, %v1782_v27  }
  0x56   :  { %1526 = vset.pattern.permute.xlu1 %v2591_v0 }
  0x57   :  { %304 = vperm.xlu0 %1565, %v1790_v28   ;;  %524 = vperm.xlu1 %1526, %v1777_v26  }
  0x5b   :  { %380 = vperm.xlu0 %1565, %v1798_v29   ;;  %528 = vperm.xlu1 %1526, %v46_v18  }
  0x5f   :  { %316 = vperm.xlu0 %1565, %v42_v14   ;;  %1527 = vset.pattern.permute.xlu1 %v2589_v19  ;;  %v846_v14 = vld [vmem:[%s2578_s2 + $0x18] sm:$0xff] }
  0x60   :  { %692 = vperm.xlu1 %1527, %v46_v18  }
  0x63   :  { %1572 = vset.pattern.permute.xlu0 %v2589_v19 }
  0x64   :  { %688 = vperm.xlu0 %1572, %v1777_v26   ;;  %1528 = vset.pattern.permute.xlu1 %v2585_v16 }
  0x65   :  { %264 = vperm.xlu1 %1528, %v1637_v3  }
  0x68   :  { %624 = vperm.xlu0 %1572, %v1637_v3  }
  0x69   :  { %1529 = vset.pattern.permute.xlu1 %v2591_v0 }
  0x6a   :  { %460 = vperm.xlu1 %1529, %v1637_v3   ;;  %v845_v3 = vld [vmem:[%s2578_s2 + $0x10] sm:$0xff] }
  0x6c   :  { %704 = vperm.xlu0 %1572, %v1811_v30  }
  0x6e   :  { %464 = vperm.xlu1 %1529, %v1643_v4  }
  0x70   :  { %640 = vperm.xlu0 %1572, %v1818_v31  }
  0x72   :  { %1530 = vset.pattern.permute.xlu1 %v2589_v19 }
  0x73   :  { %628 = vperm.xlu1 %1530, %v1643_v4  }
  0x74   :  { %720 = vperm.xlu0 %1572, %v1825_v32  }
  0x77   :  { %1531 = vset.pattern.permute.xlu1 %v2587_v1 }
  0x78   :  { %656 = vperm.xlu0 %1572, %v1833_v33   ;;  %957 = vperm.xlu1 %1531, %v859_v34  }
  0x7c   :  { %736 = vperm.xlu0 %1572, %v1843_v35   ;;  %877 = vperm.xlu1 %1531, %v843_v36  }
  0x80   :  { %672 = vperm.xlu0 %1572, %v1852_v37   ;;  %882 = vperm.xlu1 %1531, %v844_v38   ;;  %v865_v38 = vld [vmem:[%s2578_s2 + $0xb0] sm:$0xff] }
  0x81   :  { %v1858_v39 = vpop.permute.xlu1 %71  ;;  %v1860_v40 = vpop.permute.xlu0 %520 }
  0x84   :  { %1574 = vset.pattern.permute.xlu0 %v2587_v1  ;;  %166 = vperm.xlu1 %1531, %v1660_v7  }
  0x85   :  { %v1864_v41 = vpop.permute.xlu1 %76  ;;  %61 = vperm.xlu0 %1574, %v1716_v17   ;;  %v1867_v42 = vpop.permute.xlu0 %456 }
  0x88   :  { %1532 = vset.pattern.permute.xlu1 %v2585_v16 }
  0x89   :  { %v1870_v43 = vpop.permute.xlu1 %86  ;;  %66 = vperm.xlu0 %1574, %v1648_v5   ;;  %340 = vperm.xlu1 %1532, %v1660_v7   ;;  %v1874_v44 = vpop.permute.xlu0 %536  ;;  %v861_v5 = vld [vmem:[%s2578_s2 + $0x90] sm:$0xff] }
  0x8a   :  { %2612 = vst [vmem:[#allocation8_spill] sm:$0xff] %v1870_v43 }
  0x8d   :  { %v1876_v45 = vpop.permute.xlu1 %96  ;;  %81 = vperm.xlu0 %1574, %v1737_v21   ;;  %1533 = vset.pattern.permute.xlu1 %v2591_v0  ;;  %v1880_v46 = vpop.permute.xlu0 %472 }
  0x8e   :  { %2613 = vst [vmem:[#allocation9_spill] sm:$0xff] %v1876_v45  ;;  %2614 = vst [vmem:[#allocation10_spill] sm:$0xff] %v1880_v46  ;;  %532 = vperm.xlu1 %1533, %v1730_v20  }
  0x91   :  { %v1883_v47 = vpop.permute.xlu1 %106  ;;  %91 = vperm.xlu0 %1574, %v1818_v31   ;;  %v1886_v48 = vpop.permute.xlu0 %552 }
  0x92   :  { %2615 = vst [vmem:[#allocation11_spill] sm:$0xff] %v1883_v47  ;;  %2616 = vst [vmem:[#allocation12_spill] sm:$0xff] %v1886_v48  ;;  %1534 = vset.pattern.permute.xlu1 %v2589_v19  ;;  %v1117_v48 = vld [vmem:[%s2579_s4 + $0x10] sm:$0xff] }
  0x93   :  { %696 = vperm.xlu1 %1534, %v1730_v20  }
  0x95   :  { %v1890_v49 = vpop.permute.xlu1 %116  ;;  %101 = vperm.xlu0 %1574, %v1762_v24   ;;  %v1893_v50 = vpop.permute.xlu0 %488 }
  0x96   :  { %2617 = vst [vmem:[#allocation13_spill] sm:$0xff] %v1890_v49  ;;  %2618 = vst [vmem:[#allocation14_spill] sm:$0xff] %v1893_v50  ;;  %v1115_v50 = vld [vmem:[%s2579_s4] sm:$0xff] }
  0x97   :  { %700 = vperm.xlu1 %1534, %v1660_v7  }
  0x99   :  { %v1896_v51 = vpop.permute.xlu1 %126  ;;  %111 = vperm.xlu0 %1574, %v1833_v33   ;;  %v1899_v52 = vpop.permute.xlu0 %568 }
  0x9a   :  { %2619 = vst [vmem:[#allocation15_spill] sm:$0xff] %v1896_v51  ;;  %2620 = vst [vmem:[#allocation16_spill] sm:$0xff] %v1899_v52  ;;  %v2633_v51 = vmov 0  }
  0x9b   :  { %1535 = vset.pattern.permute.xlu1 %v2585_v16 }
  0x9c   :  { %276 = vperm.xlu1 %1535, %v1655_v6  }
  0x9d   :  { %v1903_v53 = vpop.permute.xlu1 %136  ;;  %121 = vperm.xlu0 %1574, %v1790_v28   ;;  %v1906_v54 = vpop.permute.xlu0 %504 }
  0x9e   :  { %2621 = vst [vmem:[#allocation17_spill] sm:$0xff] %v1903_v53  ;;  %2622 = vst [vmem:[#allocation18_spill] sm:$0xff] %v1906_v54 }
  0xa0   :  { %1536 = vset.pattern.permute.xlu1 %v2591_v0 }
  0xa1   :  { %v1909_v55 = vpop.permute.xlu1 %146  ;;  %131 = vperm.xlu0 %1574, %v1852_v37   ;;  %468 = vperm.xlu1 %1536, %v1737_v21  }
  0xa2   :  { %v1913_v56 = vpop.permute.xlu0 %320 }
  0xa5   :  { %141 = vperm.xlu0 %1574, %v1709_v15   ;;  %1537 = vset.pattern.permute.xlu1 %v2589_v19 }
  0xa6   :  { %v1917_v57 = vpop.permute.xlu1 %324  ;;  %v1919_v58 = vpop.permute.xlu0 %256  ;;  %632 = vperm.xlu1 %1537, %v1737_v21   ;;  %v864_v21 = vld [vmem:[%s2578_s2 + $0xa8] sm:$0xff] }
  0xa9   :  { %151 = vperm.xlu0 %1574, %v1777_v26  }
  0xaa   :  { %v1923_v59 = vpop.permute.xlu0 %332  ;;  %636 = vperm.xlu1 %1537, %v1655_v6  }
  0xab   :  { %v1929_v61 = vpop.permute.xlu1 %516 }
  0xad   :  { %962 = vperm.xlu0 %1574, %v860_v60  }
  0xae   :  { %v1934_v63 = vpop.permute.xlu0 %268  ;;  %1538 = vset.pattern.permute.xlu1 %v2587_v1 }
  0xaf   :  { %972 = vperm.xlu1 %1538, %v862_v62   ;;  %v850_v62 = vld [vmem:[%s2578_s2 + $0x38] sm:$0xff] }
  0xb0   :  { %v1937_v2 = vpop.permute.xlu1 %680 }
  0xb1   :  { %161 = vperm.xlu0 %1574, %v1730_v20  }
  0xb2   :  { %v1943_v4 = vpop.permute.xlu0 %336 }
  0xb3   :  { %887 = vperm.xlu1 %1538, %v845_v3  }
  0xb4   :  { %v1948_v6 = vpop.permute.xlu1 %684 }
  0xb5   :  { %967 = vperm.xlu0 %1574, %v861_v5  }
  0xb6   :  { %v1950_v7 = vpop.permute.xlu0 %272 }
  0xb7   :  { %2623 = vst [vmem:[#allocation19_spill] sm:$0xff] %v1950_v7  ;;  %171 = vperm.xlu1 %1538, %v1811_v30  }
  0xb9   :  { %v1956_v15 = vpop.permute.xlu1 %260  ;;  %892 = vperm.xlu0 %1574, %v846_v14  }
  0xba   :  { %v1958_v17 = vpop.permute.xlu0 %348 }
  0xbb   :  { %2624 = vst [vmem:[#allocation20_spill] sm:$0xff] %v1958_v17  ;;  %1539 = vset.pattern.permute.xlu1 %v2585_v16 }
  0xbc   :  { %344 = vperm.xlu1 %1539, %v1811_v30  }
  0xbd   :  { %176 = vperm.xlu0 %1574, %v1743_v22  }
  0xbe   :  { %v1963_v18 = vpop.permute.xlu0 %284  ;;  %v1965_v20 = vpop.permute.xlu1 %452 }
  0xbf   :  { %2625 = vst [vmem:[#allocation21_spill] sm:$0xff] %v1963_v18 }
  0xc0   :  { %1540 = vset.pattern.permute.xlu1 %v2591_v0 }
  0xc1   :  { %982 = vperm.xlu0 %1574, %v864_v21   ;;  %540 = vperm.xlu1 %1540, %v1811_v30  }
  0xc2   :  { %v1972_v26 = vpop.permute.xlu0 %352 }
  0xc3   :  { %2626 = vst [vmem:[#allocation22_spill] sm:$0xff] %v1972_v26  ;;  %v1974_v34 = vpop.permute.xlu1 %616  ;;  %v26_v26 = vld [vmem:[%s2581_s0] sm:$0xf] }
  0xc5   :  { %181 = vperm.xlu0 %1574, %v1754_v23   ;;  %544 = vperm.xlu1 %1540, %v1743_v22  }
  0xc6   :  { %v1978_v36 = vpop.permute.xlu0 %288 }
  0xc7   :  { %v1983_v60 = vpop.permute.xlu1 %620 }
  0xc9   :  { %987 = vperm.xlu0 %1574, %v865_v38   ;;  %1541 = vset.pattern.permute.xlu1 %v2589_v19  ;;  %v869_v19 = vld [vmem:[%s2578_s2 + $0xd0] sm:$0xff] }
  0xca   :  { %v1986_v30 = vpop.permute.xlu0 %364  ;;  %708 = vperm.xlu1 %1541, %v1743_v22   ;;  %v868_v22 = vld [vmem:[%s2578_s2 + $0xc8] sm:$0xff] }
  0xcb   :  { %2627 = vst [vmem:[#allocation23_spill] sm:$0xff] %v1986_v30  ;;  %v2637_v30 = vmov 2  }
  0xcc   :  { %v1992_v3 = vpop.permute.xlu1 %156 }
  0xcd   :  { %912 = vperm.xlu0 %1574, %v850_v62  }
  0xce   :  { %v1994_v5 = vpop.permute.xlu0 %300  ;;  %1542 = vset.pattern.permute.xlu1 %v2585_v16 }
  0xcf   :  { %2628 = vst [vmem:[#allocation24_spill] sm:$0xff] %v1994_v5  ;;  %280 = vperm.xlu1 %1542, %v1818_v31   ;;  %v873_v5 = vld [vmem:[%s2578_s2 + $0xf0] sm:$0xff] }
  0xd1   :  { %v1998_v14 = vpop.permute.xlu1 %328  ;;  %196 = vperm.xlu0 %1574, %v1769_v25  }
  0xd2   :  { %v2001_v21 = vpop.permute.xlu0 %368 }
  0xd3   :  { %2629 = vst [vmem:[#allocation25_spill] sm:$0xff] %v2001_v21  ;;  %1543 = vset.pattern.permute.xlu1 %v2591_v0  ;;  %v2631_v0 = vmov 3   ;;  %v857_v21 = vld [vmem:[%s2578_s2 + $0x70] sm:$0xff] }
  0xd4   :  { %476 = vperm.xlu1 %1543, %v1818_v31  }
  0xd5   :  { %1002 = vperm.xlu0 %1574, %v868_v22   ;;  %v854_v22 = vld [vmem:[%s2578_s2 + $0x58] sm:$0xff] }
  0xd6   :  { %v2008_v38 = vpop.permute.xlu0 %304  ;;  %v2010_v62 = vpop.permute.xlu1 %524 }
  0xd8   :  { %480 = vperm.xlu1 %1543, %v1667_v8  }
  0xd9   :  { %201 = vperm.xlu0 %1574, %v1782_v27  }
  0xda   :  { %v2014_v16 = vpop.permute.xlu0 %380  ;;  %v2016_v1 = vpop.permute.xlu1 %528 }
  0xdb   :  { %2630 = vst [vmem:[#allocation26_spill] sm:$0xff] %v2014_v16  ;;  %v863_v16 = vld [vmem:[%s2578_s2 + $0xa0] sm:$0xff] }
  0xdc   :  { %1544 = vset.pattern.permute.xlu1 %v2631_v0 }
  0xdd   :  { %644 = vperm.xlu1 %1544, %v1667_v8   ;;  %1007 = vperm.xlu0 %1574, %v869_v19   ;;  %v847_v8 = vld [vmem:[%s2578_s2 + $0x20] sm:$0xff] }
  0xde   :  { %v2023_v31 = vpop.permute.xlu0 %316 }
  0xdf   :  { %2632 = vst [vmem:[#allocation27_spill] sm:$0xff] %v2023_v31  ;;  %v2028_v53 = vpop.permute.xlu1 %692  ;;  %v872_v31 = vld [vmem:[%s2578_s2 + $0xe8] sm:$0xff] }
  0xe1   :  { %1545 = vset.pattern.permute.xlu1 %v2633_v51  ;;  %932 = vperm.xlu0 %1574, %v854_v22  }
  0xe2   :  { %977 = vperm.xlu1 %1545, %v863_v16   ;;  %v848_v16 = vld [vmem:[%s2578_s2 + $0x28] sm:$0xff] }
  0xe3   :  { %v2034_v54 = vpop.permute.xlu0 %688 }
  0xe4   :  { %v2039_v19 = vpop.permute.xlu1 %264 }
  0xe5   :  { %216 = vperm.xlu0 %1574, %v1798_v29   ;;  %v1119_v29 = vld [vmem:[%s2579_s4 + $0x20] sm:$0xff] }
  0xe6   :  { %897 = vperm.xlu1 %1545, %v847_v8  }
  0xe7   :  { %v2045_v49 = vpop.permute.xlu0 %624 }
  0xe9   :  { %v2050_v22 = vpop.permute.xlu1 %460  ;;  %1022 = vperm.xlu0 %1574, %v872_v31   ;;  %v2635_v31 = vmov 1  }
  0xea   :  { %902 = vperm.xlu1 %1545, %v848_v16  }
  0xeb   :  { %v2055_v52 = vpop.permute.xlu0 %704 }
  0xec   :  { %2634 = vst [vmem:[#allocation28_spill] sm:$0xff] %v2055_v52 }
  0xed   :  { %v2057_v8 = vpop.permute.xlu1 %464  ;;  %1027 = vperm.xlu0 %1574, %v873_v5  }
  0xee   :  { %186 = vperm.xlu1 %1545, %v1679_v10  }
  0xef   :  { %v2063_v47 = vpop.permute.xlu0 %640 }
  0xf1   :  { %947 = vperm.xlu0 %1574, %v857_v21  }
  0xf2   :  { %1546 = vset.pattern.permute.xlu1 %v2635_v31  ;;  %v2066_v16 = vpop.permute.xlu1 %628 }
  0xf3   :  { %356 = vperm.xlu1 %1546, %v1679_v10   ;;  %v2072_v5 = vpop.permute.xlu0 %720 }
  0xf4   :  { %2636 = vst [vmem:[#allocation29_spill] sm:$0xff] %v2072_v5 }
  0xf5   :  { %1125 = vperm.xlu0 %1574, %v1115_v50  }
  0xf7   :  { %1547 = vset.pattern.permute.xlu1 %v2637_v30  ;;  %v2078_v21 = vpop.permute.xlu1 %957  ;;  %v2080_v37 = vpop.permute.xlu0 %656 }
  0xf8   :  { %2638 = vst [vmem:[#allocation30_spill] sm:$0xff] %v2080_v37  ;;  %548 = vperm.xlu1 %1547, %v1754_v23   ;;  %v1121_v37 = vld [vmem:[%s2579_s4 + $0x30] sm:$0xff] }
  0xf9   :  { %1135 = vperm.xlu0 %1574, %v1117_v48  }
  0xfb   :  { %v2086_v45 = vpop.permute.xlu1 %877  ;;  %v2088_v50 = vpop.permute.xlu0 %736 }
  0xfc   :  { %2639 = vst [vmem:[#allocation31_spill] sm:$0xff] %v2088_v50  ;;  %1548 = vset.pattern.permute.xlu1 %v2631_v0  ;;  %v1277_v50 = vld [vmem:[%s2580_s6] sm:$0xff] }
  0xfd   :  { %712 = vperm.xlu1 %1548, %v1754_v23   ;;  %1145 = vperm.xlu0 %1574, %v1119_v29   ;;  %v219_v23 = vlaneseq }
  0xff   :  { %v2095_v5 = vpop.permute.xlu1 %882  ;;  %v2097_v48 = vpop.permute.xlu0 %672 }
 0x100   :  { %2640 = vst [vmem:[#allocation32_spill] sm:$0xff] %v2097_v48 }
 0x101   :  { %716 = vperm.xlu1 %1548, %v1679_v10   ;;  %1155 = vperm.xlu0 %1574, %v1121_v37   ;;  %v2110_v10 = vshrl.u32 %v219_v23, 7 }
 0x103   :  { %v2103_v18 = vpop.permute.xlu1 %166  ;;  %2642 = vst [vmem:[#allocation34_spill] sm:$0xff] %v2110_v10  ;;  %v385_v48 = vsub.s32 1, %v2110_v10 }
 0x104   :  { %2641 = vst [vmem:[#allocation33_spill] sm:$0xff] %v2103_v18  ;;  %v62_v17 = vpop.permute.xlu0 %61 }
 0x105   :  { %1549 = vset.pattern.permute.xlu1 %v2635_v31  ;;  %1280 = vperm.xlu0 %1574, %v1277_v50   ;;  %v221_v50 = vsub.s32 0, %v2110_v10  ;;  %v2126_v23 = vrot.slane %v26_v26, %v385_v48 }
 0x106   :  { %292 = vperm.xlu1 %1549, %v1674_v9  }
 0x107   :  { %v2130_v43 = vrot.slane %v26_v26, %v221_v50  ;;  %v395_v27 = vmul.f32 %v2126_v23, %v1978_v36  ;;  %v581_v50 = vsub.s32 2, %v2110_v10  ;;  %v745_v36 = vsub.s32 3, %v2110_v10 }
 0x108   :  { %v67_v29 = vpop.permute.xlu0 %66  ;;  %v2107_v52 = vpop.permute.xlu1 %340 }
 0x10a   :  { %1550 = vset.pattern.permute.xlu1 %v2637_v30 }
 0x10b   :  { %484 = vperm.xlu1 %1550, %v1762_v24  }
 0x10c   :  { %v2113_v37 = vpop.permute.xlu0 %81 }
 0x10d   :  { %2643 = vst [vmem:[#allocation35_spill] sm:$0xff] %v2113_v37  ;;  %v2116_v35 = vpop.permute.xlu1 %532 }
 0x10e   :  { %2644 = vst [vmem:[#allocation36_spill] sm:$0xff] %v2116_v35 }
 0x10f   :  { %1551 = vset.pattern.permute.xlu1 %v2631_v0 }
 0x110   :  { %v2123_v28 = vpop.permute.xlu0 %91  ;;  %648 = vperm.xlu1 %1551, %v1762_v24   ;;  %v866_v24 = vld [vmem:[%s2578_s2 + $0xb8] sm:$0xff] }
 0x112   :  { %v2128_v12 = vpop.permute.xlu1 %696 }
 0x113   :  { %2645 = vst [vmem:[#allocation37_spill] sm:$0xff] %v2128_v12 }
 0x114   :  { %v102_v46 = vpop.permute.xlu0 %101  ;;  %652 = vperm.xlu1 %1551, %v1674_v9   ;;  %v849_v9 = vld [vmem:[%s2578_s2 + $0x30] sm:$0xff] }
 0x115   :  { %v231_v37 = vmul.f32 %v2130_v43, %v102_v46  ;;  %v399_v46 = vmul.f32 %v2126_v23, %v2008_v38  ;;  %v387_v38 = vmul.f32 %v2126_v23, %v1919_v58 }
 0x116   :  { %v2136_v7 = vpop.permute.xlu1 %700 }
 0x117   :  { %v2141_v48 = vadd.f32 %v395_v27, %v231_v37  ;;  %v2155_v37 = vrot.slane %v26_v26, %v581_v50 }
 0x118   :  { %v2143_v35 = vpop.permute.xlu0 %111  ;;  %1552 = vset.pattern.permute.xlu1 %v2633_v51 }
 0x119   :  { %2646 = vst [vmem:[#allocation38_spill] sm:$0xff] %v2141_v48  ;;  %2647 = vst [vmem:[#allocation39_spill] sm:$0xff] %v2143_v35  ;;  %992 = vperm.xlu1 %1552, %v866_v24   ;;  %v2158_v48 = vrot.slane %v26_v26, %v745_v36  ;;  %v224_v24 = vmul.f32 %v2130_v43, %v67_v29  ;;  %v584_v10 = vmul.f32 %v2155_v37, %v1867_v42 }
 0x11a   :  { %v600_v58 = vmul.f32 %v2155_v37, %v1860_v40  ;;  %v583_v29 = vmul.f32 %v2155_v37, %v1965_v20  ;;  %v599_v40 = vmul.f32 %v2155_v37, %v1929_v61  ;;  %v240_v20 = vmul.f32 %v2130_v43, %v1909_v55 }
 0x11b   :  { %v2153_v12 = vpop.permute.xlu1 %276  ;;  %v748_v50 = vmul.f32 %v2158_v48, %v1983_v60  ;;  %v763_v60 = vmul.f32 %v2158_v48, %v1937_v2  ;;  %v602_v55 = vmul.f32 %v2155_v37, %v2016_v1  ;;  %v765_v1 = vmul.f32 %v2158_v48, %v2034_v54 }
 0x11c   :  { %2648 = vst [vmem:[#allocation40_spill] sm:$0xff] %v2153_v12  ;;  %v122_v27 = vpop.permute.xlu0 %121  ;;  %v388_v12 = vmul.f32 %v2126_v23, %v1956_v15  ;;  %v403_v15 = vmul.f32 %v2126_v23, %v1913_v56 }
 0x11d   :  { %v235_v35 = vmul.f32 %v2130_v43, %v122_v27  ;;  %907 = vperm.xlu1 %1552, %v849_v9   ;;  %v223_v9 = vmul.f32 %v2130_v43, %v62_v17  ;;  %v764_v17 = vmul.f32 %v2158_v48, %v1948_v6 }
 0x11e   :  { %v420_v42 = vadd.f32 %v388_v12, %v224_v24  ;;  %v404_v12 = vmul.f32 %v2126_v23, %v1917_v57  ;;  %v766_v57 = vmul.f32 %v2158_v48, %v2028_v53 }
 0x11f   :  { %v2163_v18 = vadd.f32 %v399_v46, %v235_v35  ;;  %v747_v35 = vmul.f32 %v2158_v48, %v1974_v34  ;;  %v780_v46 = vadd.f32 %v748_v50, %v584_v10  ;;  %v419_v27 = vadd.f32 %v387_v38, %v223_v9 }
 0x120   :  { %v2172_v26 = vpop.permute.xlu0 %131  ;;  %v2174_v36 = vpop.permute.xlu1 %468  ;;  %v795_v10 = vadd.f32 %v763_v60, %v599_v40  ;;  %v796_v24 = vadd.f32 %v764_v17, %v600_v58  ;;  %v436_v9 = vadd.f32 %v404_v12, %v240_v20  ;;  %v798_v17 = vadd.f32 %v766_v57, %v602_v55 }
 0x121   :  { %2649 = vst [vmem:[#allocation41_spill] sm:$0xff] %v2163_v18  ;;  %2650 = vst [vmem:[#allocation42_spill] sm:$0xff] %v2172_v26  ;;  %191 = vperm.xlu1 %1552, %v1825_v32   ;;  %v779_v34 = vadd.f32 %v747_v35, %v583_v29  ;;  %v812_v6 = vadd.f32 %v780_v46, %v420_v42  ;;  %v406_v35 = vmul.f32 %v2126_v23, %v1923_v59 }
 0x122   :  { %v242_v42 = vmul.f32 %v2130_v43, %v1992_v3  ;;  %v405_v59 = vmul.f32 %v2126_v23, %v1998_v14  ;;  %v585_v46 = vmul.f32 %v2155_v37, %v2050_v22  ;;  %v389_v14 = vmul.f32 %v2126_v23, %v2039_v19 }
 0x123   :  { %v811_v61 = vadd.f32 %v779_v34, %v419_v27  ;;  %v1036_v58 = vadd.f32 %v2095_v5, %v812_v6  ;;  %v749_v5 = vmul.f32 %v2158_v48, %v2045_v49  ;;  %v225_v22 = vmul.f32 %v2130_v43, %v1858_v39 }
 0x124   :  { %v142_v26 = vpop.permute.xlu0 %141  ;;  %v438_v27 = vadd.f32 %v406_v35, %v242_v42 }
 0x125   :  { %v239_v56 = vmul.f32 %v2130_v43, %v142_v26  ;;  %1553 = vset.pattern.permute.xlu1 %v2635_v31  ;;  %v2195_v2 = vpop.permute.xlu1 %632  ;;  %v1035_v3 = vadd.f32 %v2086_v45, %v811_v61  ;;  %v1068_v12 = vmax.f32 %v1036_v58, 0.0  ;;  %v750_v45 = vmul.f32 %v2158_v48, %v2066_v16 }
 0x126   :  { %360 = vperm.xlu1 %1553, %v1825_v32   ;;  %v781_v20 = vadd.f32 %v749_v5, %v585_v46  ;;  %v586_v16 = vmul.f32 %v2155_v37, %v2057_v8 }
 0x127   :  { %v435_v38 = vadd.f32 %v403_v15, %v239_v56  ;;  %v828_v15 = vadd.f32 %v796_v24, %v436_v9  ;;  %v390_v56 = vmul.f32 %v2126_v23, %v1934_v63  ;;  %v1067_v19 = vmax.f32 %v1035_v3, 0.0 }
 0x128   :  { %v152_v50 = vpop.permute.xlu0 %151  ;;  %v226_v24 = vmul.f32 %v2130_v43, %v1864_v41  ;;  %v782_v39 = vadd.f32 %v750_v45, %v586_v16  ;;  %v2652_v16 = vld [vmem:[#allocation37_spill] sm:$0xff] }
 0x129   :  { %v2202_v26 = vpop.permute.xlu1 %636  ;;  %v827_v18 = vadd.f32 %v795_v10, %v435_v38  ;;  %v241_v53 = vmul.f32 %v2130_v43, %v152_v50  ;;  %v421_v38 = vadd.f32 %v389_v14, %v225_v22  ;;  %v1467_v61 = vpack.c.bf16 %v1068_v12, %v1067_v19  ;;  %v852_v14 = vld [vmem:[%s2578_s2 + $0x48] sm:$0xff] }
 0x12a   :  { %1554 = vset.pattern.permute.xlu1 %v2637_v30  ;;  %v422_v35 = vadd.f32 %v390_v56, %v226_v24  ;;  %v408_v19 = vmul.f32 %v2126_v23, %v2107_v52 }
 0x12b   :  { %556 = vperm.xlu1 %1554, %v1825_v32   ;;  %v1051_v60 = vadd.f32 %v2078_v21, %v827_v18  ;;  %v601_v18 = vmul.f32 %v2155_v37, %v2010_v62  ;;  %v437_v54 = vadd.f32 %v405_v59, %v241_v53  ;;  %v830_v62 = vadd.f32 %v798_v17, %v438_v27  ;;  %v867_v27 = vld [vmem:[%s2578_s2 + $0xc0] sm:$0xff] }
 0x12c   :  { %v963_v29 = vpop.permute.xlu0 %962  ;;  %v813_v42 = vadd.f32 %v781_v20, %v421_v38 }
 0x12d   :  { %v1052_v32 = vadd.f32 %v963_v29, %v828_v15  ;;  %v1083_v49 = vmax.f32 %v1051_v60, 0.0  ;;  %v797_v6 = vadd.f32 %v765_v1, %v601_v18  ;;  %v814_v15 = vadd.f32 %v782_v39, %v422_v35 }
 0x12e   :  { %v973_v21 = vpop.permute.xlu1 %972 }
 0x12f   :  { %v1084_v40 = vmax.f32 %v1052_v32, 0.0  ;;  %560 = vperm.xlu1 %1554, %v1769_v25   ;;  %v1054_v50 = vadd.f32 %v973_v21, %v830_v62  ;;  %v829_v63 = vadd.f32 %v797_v6, %v437_v54  ;;  %v229_v21 = vmul.f32 %v2130_v43, %v2123_v28 }
 0x130   :  { %v2235_v34 = vpop.permute.xlu0 %161  ;;  %v407_v28 = vmul.f32 %v2126_v23, %v1943_v4 }
 0x131   :  { %v1465_v10 = vpack.c.bf16 %v1084_v40, %v1083_v49  ;;  %v1086_v58 = vmax.f32 %v1054_v50, 0.0  ;;  %v604_v40 = vmul.f32 %v2155_v37, %v1874_v44  ;;  %v768_v49 = vmul.f32 %v2158_v48, %v2136_v7  ;;  %v2651_v7 = vld [vmem:[#allocation33_spill] sm:$0xff] }
 0x132   :  { %v888_v57 = vpop.permute.xlu1 %887  ;;  %v243_v6 = vmul.f32 %v2130_v43, %v2235_v34  ;;  %v244_v20 = vmul.f32 %v2130_v43, %v2651_v7  ;;  %v2654_v34 = vld [vmem:[#allocation19_spill] sm:$0xff] }
 0x133   :  { %1555 = vset.pattern.permute.xlu1 %v2631_v0  ;;  %1466 = vmatprep.subr.bf16.mxu0 %v1465_v10  ;;  %v1037_v41 = vadd.f32 %v888_v57, %v813_v42  ;;  %v767_v10 = vmul.f32 %v2158_v48, %v2652_v16  ;;  %v800_v24 = vadd.f32 %v768_v49, %v604_v40  ;;  %v2653_v57 = vld [vmem:[#allocation36_spill] sm:$0xff] }
 0x134   :  { %v968_v9 = vpop.permute.xlu0 %967  ;;  %724 = vperm.xlu1 %1555, %v1769_v25   ;;  %1468 = vmatpush3.bf16.msra.mxu0 %v1467_v61  ;;  %v440_v38 = vadd.f32 %v408_v19, %v244_v20  ;;  %v603_v4 = vmul.f32 %v2155_v37, %v2653_v57  ;;  %v439_v61 = vadd.f32 %v407_v28, %v243_v6  ;;  %v2660_v20 = vld [vmem:[#allocation2_spill] sm:$0xff] }
 0x135   :  { %v1053_v8 = vadd.f32 %v968_v9, %v829_v63  ;;  %v1069_v29 = vmax.f32 %v1037_v41, 0.0  ;;  %v391_v39 = vmul.f32 %v2126_v23, %v2654_v34  ;;  %v2655_v63 = vld [vmem:[#allocation35_spill] sm:$0xff]  ;;  %v751_v42 = vmul.f32 %v2158_v48, %v2195_v2 }
 0x136   :  { %v2243_v55 = vpop.permute.xlu1 %171  ;;  %v227_v9 = vmul.f32 %v2130_v43, %v2655_v63  ;;  %v799_v35 = vadd.f32 %v767_v10, %v603_v4  ;;  %v2661_v10 = vld [vmem:[#allocation4_spill] sm:$0xff] }
 0x137   :  { %v1085_v53 = vmax.f32 %v1053_v8, 0.0  ;;  %v832_v8 = vadd.f32 %v800_v24, %v440_v38  ;;  %v2662_v38 = vld [vmem:[#allocation22_spill] sm:$0xff] }
 0x138   :  { %v893_v60 = vpop.permute.xlu0 %892  ;;  %1556 = vset.pattern.permute.xlu1 %v2635_v31  ;;  %v411_v57 = vmul.f32 %v2126_v23, %v2662_v38 }
 0x139   :  { %v1469_v59 = vpack.c.bf16 %v1086_v58, %v1085_v53  ;;  %v1038_v17 = vadd.f32 %v893_v60, %v814_v15  ;;  %296 = vperm.xlu1 %1556, %v1833_v33   ;;  %v2656_v58 = vld [vmem:[#allocation10_spill] sm:$0xff]  ;;  %v587_v53 = vmul.f32 %v2155_v37, %v2174_v36  ;;  %v752_v15 = vmul.f32 %v2158_v48, %v2202_v26 }
 0x13a   :  { %v588_v41 = vmul.f32 %v2155_v37, %v2656_v58 }
 0x13b   :  { %v1070_v3 = vmax.f32 %v1038_v17, 0.0  ;;  %v2247_v25 = vpop.permute.xlu1 %344  ;;  %1470 = vmatprep.subr.bf16.mxu0 %v1469_v59  ;;  %v831_v59 = vadd.f32 %v799_v35, %v439_v61  ;;  %v783_v2 = vadd.f32 %v751_v42, %v587_v53  ;;  %v870_v35 = vld [vmem:[%s2578_s2 + $0xd8] sm:$0xff]  ;;  %v2663_v53 = vld [vmem:[#allocation6_spill] sm:$0xff] }
 0x13c   :  { %v2280_v62 = vpop.permute.xlu0 %176  ;;  %v784_v36 = vadd.f32 %v752_v15, %v588_v41  ;;  %v2664_v15 = vld [vmem:[#allocation28_spill] sm:$0xff] }
 0x13d   :  { %v1471_v1 = vpack.c.bf16 %v1070_v3, %v1069_v29  ;;  %1557 = vset.pattern.permute.xlu1 %v2637_v30  ;;  %v423_v29 = vadd.f32 %v391_v39, %v227_v9  ;;  %v2657_v3 = vld [vmem:[#allocation40_spill] sm:$0xff] }
 0x13e   :  { %492 = vperm.xlu1 %1557, %v1833_v33   ;;  %v851_v33 = vld [vmem:[%s2578_s2 + $0x40] sm:$0xff] }
 0x13f   :  { %1472 = vmatpush3.bf16.msra.mxu0 %v1471_v1  ;;  %v392_v1 = vmul.f32 %v2126_v23, %v2657_v3  ;;  %v409_v3 = vmul.f32 %v2126_v23, %v2247_v25  ;;  %v245_v25 = vmul.f32 %v2130_v43, %v2243_v55  ;;  %v2668_v55 = vld [vmem:[#allocation38_spill] sm:$0xff] }
 0x140   :  { %v2251_v5 = vpop.permute.xlu1 %540  ;;  %v983_v50 = vpop.permute.xlu0 %982 }
 0x141   :  { %v1056_v60 = vadd.f32 %v983_v50, %v832_v8  ;;  %v853_v8 = vld [vmem:[%s2578_s2 + $0x50] sm:$0xff] }
 0x142   :  { %496 = vperm.xlu1 %1557, %v1686_v11  }
 0x144   :  { %v2254_v46 = vpop.permute.xlu1 %544 }
 0x146   :  { %1558 = vset.pattern.permute.xlu1 %v2631_v0 }
 0x147   :  { %660 = vperm.xlu1 %1558, %v1686_v11   ;;  %v753_v11 = vmul.f32 %v2158_v48, %v2063_v47 }
 0x149   :  { %v2258_v32 = vpop.permute.xlu1 %708 }
 0x14b   :  { %1559 = vset.pattern.permute.xlu1 %v2633_v51 }
 0x14c   :  { %997 = vperm.xlu1 %1559, %v867_v27  }
 0x14e   :  { %v281_v18 = vpop.permute.xlu1 %280 }
 0x14f   :  { %v393_v12 = vmul.f32 %v2126_v23, %v281_v18  ;;  %v2659_v18 = vld [vmem:[#allocation8_spill] sm:$0xff] }
 0x150   :  { %917 = vperm.xlu1 %1559, %v851_v33   ;;  %v2658_v33 = vld [vmem:[#allocation3_spill] sm:$0xff] }
 0x151   :  { %v425_v22 = vadd.f32 %v393_v12, %v229_v21 }
 0x153   :  { %v477_v45 = vpop.permute.xlu1 %476 }
 0x154   :  { %v589_v54 = vmul.f32 %v2155_v37, %v477_v45  ;;  %922 = vperm.xlu1 %1559, %v852_v14   ;;  %v228_v14 = vmul.f32 %v2130_v43, %v2659_v18  ;;  %v815_v45 = vadd.f32 %v783_v2, %v423_v29  ;;  %v770_v2 = vmul.f32 %v2158_v48, %v2258_v32  ;;  %v2666_v18 = vld [vmem:[#allocation21_spill] sm:$0xff] }
 0x155   :  { %v606_v32 = vmul.f32 %v2155_v37, %v2254_v46 }
 0x156   :  { %v785_v56 = vadd.f32 %v753_v11, %v589_v54  ;;  %v1088_v11 = vmax.f32 %v1056_v60, 0.0  ;;  %v424_v12 = vadd.f32 %v392_v1, %v228_v14  ;;  %v769_v60 = vmul.f32 %v2158_v48, %v2664_v15 }
 0x157   :  { %v2282_v47 = vpop.permute.xlu1 %480  ;;  %v246_v1 = vmul.f32 %v2130_v43, %v2280_v62 }
 0x158   :  { %206 = vperm.xlu1 %1559, %v1698_v13   ;;  %v2291_v44 = vadd.f32 %v785_v56, %v425_v22  ;;  %v816_v49 = vadd.f32 %v784_v36, %v424_v12  ;;  %v441_v12 = vadd.f32 %v409_v3, %v245_v25 }
 0x15c   :  { %1560 = vset.pattern.permute.xlu1 %v2635_v31  ;;  %v2300_v52 = vpop.permute.xlu1 %644 }
 0x15d   :  { %372 = vperm.xlu1 %1560, %v1698_v13  }
 0x161   :  { %1561 = vset.pattern.permute.xlu1 %v2637_v30  ;;  %v978_v17 = vpop.permute.xlu1 %977 }
 0x162   :  { %v1055_v27 = vadd.f32 %v978_v17, %v831_v59  ;;  %564 = vperm.xlu1 %1561, %v2658_v33   ;;  %v605_v59 = vmul.f32 %v2155_v37, %v2251_v5  ;;  %v2665_v17 = vld [vmem:[#allocation20_spill] sm:$0xff]  ;;  %v394_v5 = vmul.f32 %v2126_v23, %v2666_v18 }
 0x163   :  { %v410_v29 = vmul.f32 %v2126_v23, %v2665_v17 }
 0x164   :  { %v1087_v21 = vmax.f32 %v1055_v27, 0.0  ;;  %v754_v27 = vmul.f32 %v2158_v48, %v2300_v52  ;;  %v801_v62 = vadd.f32 %v769_v60, %v605_v59  ;;  %v590_v52 = vmul.f32 %v2155_v37, %v2282_v47  ;;  %v2671_v59 = vld [vmem:[#allocation29_spill] sm:$0xff] }
 0x165   :  { %v898_v26 = vpop.permute.xlu1 %897  ;;  %v773_v17 = vmul.f32 %v2158_v48, %v2671_v59 }
 0x166   :  { %1562 = vset.pattern.permute.xlu1 %v2631_v0  ;;  %v1473_v54 = vpack.c.bf16 %v1088_v11, %v1087_v21  ;;  %v1039_v40 = vadd.f32 %v898_v26, %v815_v45  ;;  %v2667_v11 = vld [vmem:[#allocation9_spill] sm:$0xff]  ;;  %v442_v45 = vadd.f32 %v410_v29, %v246_v1 }
 0x167   :  { %728 = vperm.xlu1 %1562, %v2658_v33   ;;  %v230_v21 = vmul.f32 %v2130_v43, %v2667_v11 }
 0x168   :  { %1474 = vmatprep.subr.bf16.mxu0 %v1473_v54  ;;  %v1071_v28 = vmax.f32 %v1039_v40, 0.0  ;;  %v802_v54 = vadd.f32 %v770_v2, %v606_v32  ;;  %v786_v40 = vadd.f32 %v754_v27, %v590_v52  ;;  %v2673_v52 = vld [vmem:[#allocation39_spill] sm:$0xff] }
 0x169   :  { %v903_v22 = vpop.permute.xlu1 %902  ;;  %v426_v46 = vadd.f32 %v394_v5, %v230_v21  ;;  %v233_v11 = vmul.f32 %v2130_v43, %v2673_v52  ;;  %v855_v21 = vld [vmem:[%s2578_s2 + $0x60] sm:$0xff] }
 0x16a   :  { %v1040_v56 = vadd.f32 %v903_v22, %v816_v49 }
 0x16b   :  { %732 = vperm.xlu1 %1562, %v1698_v13   ;;  %v182_v13 = vpop.permute.xlu0 %181 }
 0x16c   :  { %v1072_v19 = vmax.f32 %v1040_v56, 0.0  ;;  %v247_v4 = vmul.f32 %v2130_v43, %v182_v13 }
 0x16d   :  { %v2324_v6 = vpop.permute.xlu1 %186 }
 0x16e   :  { %v1475_v7 = vpack.c.bf16 %v1072_v19, %v1071_v28  ;;  %v443_v50 = vadd.f32 %v411_v57, %v247_v4  ;;  %v833_v28 = vadd.f32 %v801_v62, %v441_v12  ;;  %v818_v19 = vadd.f32 %v786_v40, %v426_v46 }
 0x16f   :  { %1563 = vset.pattern.permute.xlu1 %v2635_v31  ;;  %v988_v22 = vpop.permute.xlu0 %987 }
 0x170   :  { %308 = vperm.xlu1 %1563, %v2660_v20   ;;  %1476 = vmatpush3.bf16.msra.mxu0 %v1475_v7  ;;  %v1057_v47 = vadd.f32 %v988_v22, %v833_v28  ;;  %v834_v7 = vadd.f32 %v802_v54, %v442_v45  ;;  %v2674_v22 = vld [vmem:[#allocation30_spill] sm:$0xff] }
 0x172   :  { %v2328_v16 = vpop.permute.xlu1 %356  ;;  %v1089_v38 = vmax.f32 %v1057_v47, 0.0  ;;  %v874_v47 = vld [vmem:[%s2578_s2 + $0xf8] sm:$0xff] }
 0x173   :  { %v913_v13 = vpop.permute.xlu0 %912 }
 0x174   :  { %1564 = vset.pattern.permute.xlu1 %v2637_v30  ;;  %v1042_v57 = vadd.f32 %v913_v13, %v818_v19  ;;  %v2675_v19 = vld [vmem:[#allocation12_spill] sm:$0xff]  ;;  %v248_v13 = vmul.f32 %v2130_v43, %v2324_v6 }
 0x175   :  { %500 = vperm.xlu1 %1564, %v2661_v10  }
 0x177   :  { %v549_v24 = vpop.permute.xlu1 %548 }
 0x178   :  { %v607_v34 = vmul.f32 %v2155_v37, %v549_v24  ;;  %v2669_v24 = vld [vmem:[#allocation5_spill] sm:$0xff] }
 0x179   :  { %1566 = vset.pattern.permute.xlu1 %v2631_v0 }
 0x17a   :  { %664 = vperm.xlu1 %1566, %v2661_v10  }
 0x17c   :  { %v713_v61 = vpop.permute.xlu1 %712 }
 0x17d   :  { %v771_v39 = vmul.f32 %v2158_v48, %v713_v61 }
 0x17e   :  { %668 = vperm.xlu1 %1566, %v2660_v20  }
 0x17f   :  { %v803_v63 = vadd.f32 %v771_v39, %v607_v34 }
 0x180   :  { %v2340_v9 = vpop.permute.xlu1 %716 }
 0x181   :  { %v2345_v42 = vadd.f32 %v803_v63, %v443_v50  ;;  %v1074_v50 = vmax.f32 %v1042_v57, 0.0  ;;  %v772_v46 = vmul.f32 %v2158_v48, %v2340_v9  ;;  %v858_v57 = vld [vmem:[%s2578_s2 + $0x78] sm:$0xff] }
 0x182   :  { %1567 = vset.pattern.permute.xlu1 %v2633_v51 }
 0x183   :  { %1012 = vperm.xlu1 %1567, %v870_v35  }
 0x185   :  { %v2351_v58 = vpop.permute.xlu1 %292 }
 0x187   :  { %927 = vperm.xlu1 %1567, %v853_v8  }
 0x18a   :  { %v485_v41 = vpop.permute.xlu1 %484 }
 0x18b   :  { %211 = vperm.xlu1 %1567, %v2663_v53   ;;  %v591_v14 = vmul.f32 %v2155_v37, %v485_v41  ;;  %v2670_v41 = vld [vmem:[#allocation7_spill] sm:$0xff] }
 0x18f   :  { %1568 = vset.pattern.permute.xlu1 %v2635_v31  ;;  %v649_v33 = vpop.permute.xlu1 %648 }
 0x190   :  { %v755_v36 = vmul.f32 %v2158_v48, %v649_v33  ;;  %376 = vperm.xlu1 %1568, %v2663_v53   ;;  %v2672_v33 = vld [vmem:[#allocation23_spill] sm:$0xff] }
 0x191   :  { %v414_v18 = vmul.f32 %v2126_v23, %v2672_v33  ;;  %v1122_v33 = vld [vmem:[%s2579_s4 + $0x38] sm:$0xff] }
 0x192   :  { %v787_v26 = vadd.f32 %v755_v36, %v591_v14  ;;  %v871_v36 = vld [vmem:[%s2578_s2 + $0xe0] sm:$0xff] }
 0x193   :  { %v2382_v49 = vpop.permute.xlu1 %652 }
 0x194   :  { %1569 = vset.pattern.permute.xlu1 %v2637_v30  ;;  %v2386_v56 = vadd.f32 %v787_v26, %v2668_v55  ;;  %v757_v55 = vmul.f32 %v2158_v48, %v2674_v22  ;;  %v756_v6 = vmul.f32 %v2158_v48, %v2382_v49  ;;  %v2677_v49 = vld [vmem:[#allocation11_spill] sm:$0xff] }
 0x195   :  { %572 = vperm.xlu1 %1569, %v2663_v53  }
 0x198   :  { %v993_v20 = vpop.permute.xlu1 %992 }
 0x199   :  { %v1058_v10 = vadd.f32 %v993_v20, %v834_v7  ;;  %576 = vperm.xlu1 %1569, %v2669_v24   ;;  %v608_v7 = vmul.f32 %v2155_v37, %v2675_v19  ;;  %v412_v20 = vmul.f32 %v2126_v23, %v2328_v16  ;;  %v1116_v16 = vld [vmem:[%s2579_s4 + $0x8] sm:$0xff] }
 0x19b   :  { %v1090_v4 = vmax.f32 %v1058_v10, 0.0  ;;  %v804_v9 = vadd.f32 %v772_v46, %v608_v7 }
 0x19c   :  { %v908_v61 = vpop.permute.xlu1 %907 }
 0x19d   :  { %v1477_v34 = vpack.c.bf16 %v1090_v4, %v1089_v38  ;;  %v1041_v39 = vadd.f32 %v908_v61, %v2291_v44  ;;  %1570 = vset.pattern.permute.xlu1 %v2631_v0  ;;  %v444_v4 = vadd.f32 %v412_v20, %v248_v13 }
 0x19e   :  { %740 = vperm.xlu1 %1570, %v2669_v24  }
 0x19f   :  { %v1073_v63 = vmax.f32 %v1041_v39, 0.0  ;;  %1478 = vmatprep.subr.bf16.mxu0 %v1477_v34  ;;  %v836_v61 = vadd.f32 %v804_v9, %v444_v4 }
 0x1a0   :  { %v192_v35 = vpop.permute.xlu1 %191 }
 0x1a1   :  { %v1479_v8 = vpack.c.bf16 %v1074_v50, %v1073_v63  ;;  %v249_v15 = vmul.f32 %v2130_v43, %v192_v35  ;;  %v1118_v35 = vld [vmem:[%s2579_s4 + $0x18] sm:$0xff] }
 0x1a2   :  { %1571 = vset.pattern.permute.xlu1 %v2635_v31  ;;  %v1581_v31 = vld [vmem:[%s2577_s1 + $0x78] sm:$0xff] }
 0x1a3   :  { %312 = vperm.xlu1 %1571, %v2670_v41   ;;  %1480 = vmatpush3.bf16.msra.mxu0 %v1479_v8  ;;  %v2676_v8 = vld [vmem:[#allocation14_spill] sm:$0xff] }
 0x1a5   :  { %v361_v53 = vpop.permute.xlu1 %360 }
 0x1a6   :  { %v413_v60 = vmul.f32 %v2126_v23, %v361_v53  ;;  %v396_v53 = vmul.f32 %v2126_v23, %v2351_v58 }
 0x1a7   :  { %1573 = vset.pattern.permute.xlu1 %v2637_v30  ;;  %v197_v30 = vpop.permute.xlu0 %196 }
 0x1a8   :  { %v445_v44 = vadd.f32 %v413_v60, %v249_v15  ;;  %508 = vperm.xlu1 %1573, %v2670_v41   ;;  %v250_v5 = vmul.f32 %v2130_v43, %v197_v30  ;;  %v592_v41 = vmul.f32 %v2155_v37, %v2676_v8  ;;  %v1100_v60 = vld [vmem:[%s2582_s3 + $0x8] sm:$0xff] }
 0x1a9   :  { %1227 = vmatprep.mubr.f32.mxu0 %v1100_v60  ;;  %v2682_v60 = vld [vmem:[#allocation41_spill] sm:$0xff] }
 0x1aa   :  { %v557_v29 = vpop.permute.xlu1 %556  ;;  %v446_v32 = vadd.f32 %v414_v18, %v250_v5  ;;  %v788_v59 = vadd.f32 %v756_v6, %v592_v41 }
 0x1ab   :  { %v609_v3 = vmul.f32 %v2155_v37, %v557_v29  ;;  %v1003_v39 = vpop.permute.xlu0 %1002 }
 0x1ac   :  { %512 = vperm.xlu1 %1573, %v1581_v31   ;;  %v1060_v50 = vadd.f32 %v1003_v39, %v836_v61  ;;  %v2680_v39 = vld [vmem:[#allocation24_spill] sm:$0xff] }
 0x1ad   :  { %v805_v1 = vadd.f32 %v773_v17, %v609_v3  ;;  %v398_v6 = vmul.f32 %v2126_v23, %v2680_v39  ;;  %v2687_v39 = vld [vmem:[#allocation15_spill] sm:$0xff] }
 0x1ae   :  { %v561_v2 = vpop.permute.xlu1 %560  ;;  %v1092_v29 = vmax.f32 %v1060_v50, 0.0 }
 0x1af   :  { %v2405_v27 = vadd.f32 %v805_v1, %v445_v44  ;;  %v610_v25 = vmul.f32 %v2155_v37, %v561_v2  ;;  %v232_v44 = vmul.f32 %v2130_v43, %v2677_v49 }
 0x1b0   :  { %1575 = vset.pattern.permute.xlu1 %v2631_v0 }
 0x1b1   :  { %676 = vperm.xlu1 %1575, %v1581_v31   ;;  %v1120_v31 = vld [vmem:[%s2579_s4 + $0x28] sm:$0xff]  ;;  %v428_v58 = vadd.f32 %v396_v53, %v232_v44 }
 0x1b3   :  { %v725_v14 = vpop.permute.xlu1 %724  ;;  %v820_v2 = vadd.f32 %v788_v59, %v428_v58 }
 0x1b4   :  { %v774_v62 = vmul.f32 %v2158_v48, %v725_v14 }
 0x1b5   :  { %1576 = vset.pattern.permute.xlu1 %v2633_v51  ;;  %v856_v51 = vld [vmem:[%s2578_s2 + $0x68] sm:$0xff] }
 0x1b6   :  { %v806_v0 = vadd.f32 %v774_v62, %v610_v25  ;;  %1017 = vperm.xlu1 %1576, %v871_v36  }
 0x1b8   :  { %v297_v26 = vpop.permute.xlu1 %296  ;;  %v2422_v12 = vadd.f32 %v806_v0, %v446_v32 }
 0x1b9   :  { %v397_v45 = vmul.f32 %v2126_v23, %v297_v26 }
 0x1ba   :  { %937 = vperm.xlu1 %1576, %v855_v21   ;;  %v2678_v21 = vld [vmem:[#allocation25_spill] sm:$0xff] }
 0x1bb   :  { %v429_v54 = vadd.f32 %v397_v45, %v233_v11  ;;  %v202_v11 = vpop.permute.xlu0 %201  ;;  %v415_v26 = vmul.f32 %v2126_v23, %v2678_v21 }
 0x1bc   :  { %v251_v45 = vmul.f32 %v2130_v43, %v202_v11 }
 0x1bd   :  { %v493_v40 = vpop.permute.xlu1 %492 }
 0x1be   :  { %v593_v28 = vmul.f32 %v2155_v37, %v493_v40  ;;  %942 = vperm.xlu1 %1576, %v856_v51   ;;  %v447_v22 = vadd.f32 %v415_v26, %v251_v45 }
 0x1c0   :  { %v789_v10 = vadd.f32 %v757_v55, %v593_v28  ;;  %v2679_v28 = vld [vmem:[#allocation16_spill] sm:$0xff] }
 0x1c1   :  { %v2440_v24 = vpop.permute.xlu1 %496 }
 0x1c2   :  { %1032 = vperm.xlu1 %1576, %v874_v47   ;;  %v2444_v38 = vadd.f32 %v789_v10, %v429_v54  ;;  %v612_v47 = vmul.f32 %v2155_v37, %v2679_v28  ;;  %v594_v50 = vmul.f32 %v2155_v37, %v2440_v24 }
 0x1c6   :  { %952 = vperm.xlu1 %1576, %v858_v57   ;;  %v661_v34 = vpop.permute.xlu1 %660 }
 0x1c7   :  { %v758_v57 = vmul.f32 %v2158_v48, %v661_v34 }
 0x1c9   :  { %v790_v41 = vadd.f32 %v758_v57, %v594_v50  ;;  %v2686_v57 = vld [vmem:[#allocation18_spill] sm:$0xff] }
 0x1ca   :  { %1130 = vperm.xlu1 %1576, %v1116_v16  }
 0x1cb   :  { %v998_v63 = vpop.permute.xlu1 %997 }
 0x1cc   :  { %v1059_v15 = vadd.f32 %v998_v63, %v2345_v42 }
 0x1ce   :  { %v1091_v17 = vmax.f32 %v1059_v15, 0.0  ;;  %1140 = vperm.xlu1 %1576, %v1118_v35   ;;  %v2681_v35 = vld [vmem:[#allocation13_spill] sm:$0xff]  ;;  %v1008_v15 = vpop.permute.xlu0 %1007 }
 0x1cf   :  { %v918_v3 = vpop.permute.xlu1 %917  ;;  %v234_v8 = vmul.f32 %v2130_v43, %v2681_v35  ;;  %v1061_v59 = vadd.f32 %v1008_v15, %v2405_v27 }
 0x1d0   :  { %v1481_v1 = vpack.c.bf16 %v1092_v29, %v1091_v17  ;;  %v1043_v42 = vadd.f32 %v918_v3, %v2386_v56 }
 0x1d1   :  { %v430_v49 = vadd.f32 %v398_v6, %v234_v8  ;;  %v236_v6 = vmul.f32 %v2130_v43, %v2687_v39  ;;  %v1113_v39 = vld [vmem:[%s2582_s3 + $0x70] sm:$0xff] }
 0x1d2   :  { %1150 = vperm.xlu1 %1576, %v1120_v31   ;;  %1482 = vmatprep.subr.bf16.mxu0 %v1481_v1  ;;  %v1075_v5 = vmax.f32 %v1043_v42, 0.0  ;;  %v933_v3 = vpop.permute.xlu0 %932  ;;  %v1093_v31 = vmax.f32 %v1061_v59, 0.0 }
 0x1d3   :  { %v923_v30 = vpop.permute.xlu1 %922  ;;  %v822_v44 = vadd.f32 %v790_v41, %v430_v49 }
 0x1d4   :  { %v1044_v18 = vadd.f32 %v923_v30, %v820_v2 }
 0x1d5   :  { %v1046_v24 = vadd.f32 %v933_v3, %v822_v44 }
 0x1d6   :  { %v1076_v14 = vmax.f32 %v1044_v18, 0.0  ;;  %1160 = vperm.xlu1 %1576, %v1122_v33  }
 0x1d7   :  { %v207_v36 = vpop.permute.xlu1 %206  ;;  %v1078_v33 = vmax.f32 %v1046_v24, 0.0 }
 0x1d8   :  { %v1483_v25 = vpack.c.bf16 %v1076_v14, %v1075_v5  ;;  %v252_v32 = vmul.f32 %v2130_v43, %v207_v36 }
 0x1da   :  { %1484 = vmatpush3.bf16.msra.mxu0 %v1483_v25 }
 0x1dc   :  { %v373_v62 = vpop.permute.xlu1 %372 }
 0x1dd   :  { %v416_v56 = vmul.f32 %v2126_v23, %v373_v62 }
 0x1df   :  { %v448_v0 = vadd.f32 %v416_v56, %v252_v32  ;;  %v2683_v56 = vld [vmem:[#allocation32_spill] sm:$0xff] }
 0x1e1   :  { %v565_v52 = vpop.permute.xlu1 %564 }
 0x1e2   :  { %v611_v51 = vmul.f32 %v2155_v37, %v565_v52  ;;  %v2684_v52 = vld [vmem:[#allocation42_spill] sm:$0xff] }
 0x1e6   :  { %v729_v54 = vpop.permute.xlu1 %728 }
 0x1e7   :  { %v775_v40 = vmul.f32 %v2158_v48, %v729_v54 }
 0x1e9   :  { %v807_v55 = vadd.f32 %v775_v40, %v611_v51  ;;  %v217_v51 = vpop.permute.xlu0 %216 }
 0x1ea   :  { %v733_v46 = vpop.permute.xlu1 %732  ;;  %v254_v44 = vmul.f32 %v2130_v43, %v217_v51 }
 0x1eb   :  { %v776_v19 = vmul.f32 %v2158_v48, %v733_v46  ;;  %v839_v7 = vadd.f32 %v807_v55, %v447_v22 }
 0x1ed   :  { %v808_v20 = vadd.f32 %v776_v19, %v612_v47  ;;  %v1023_v22 = vpop.permute.xlu0 %1022  ;;  %v2685_v47 = vld [vmem:[#allocation31_spill] sm:$0xff] }
 0x1ee   :  { %v777_v19 = vmul.f32 %v2158_v48, %v2685_v47  ;;  %v1105_v47 = vld [vmem:[%s2582_s3 + $0x30] sm:$0xff] }
 0x1ef   :  { %v840_v10 = vadd.f32 %v808_v20, %v448_v0  ;;  %v309_v13 = vpop.permute.xlu1 %308  ;;  %v761_v0 = vmul.f32 %v2158_v48, %v2683_v56 }
 0x1f1   :  { %v1064_v28 = vadd.f32 %v1023_v22, %v840_v10  ;;  %v1028_v24 = vpop.permute.xlu0 %1027  ;;  %v1102_v22 = vld [vmem:[%s2582_s3 + $0x18] sm:$0xff] }
 0x1f3   :  { %v1096_v41 = vmax.f32 %v1064_v28, 0.0  ;;  %v1106_v28 = vld [vmem:[%s2582_s3 + $0x38] sm:$0xff] }
 0x1f4   :  { %v501_v9 = vpop.permute.xlu1 %500 }
 0x1f5   :  { %v595_v61 = vmul.f32 %v2155_v37, %v501_v9 }
 0x1f9   :  { %v665_v4 = vpop.permute.xlu1 %664 }
 0x1fa   :  { %v759_v16 = vmul.f32 %v2158_v48, %v665_v4  ;;  %v596_v4 = vmul.f32 %v2155_v37, %v2686_v57  ;;  %v1109_v57 = vld [vmem:[%s2582_s3 + $0x50] sm:$0xff] }
 0x1fc   :  { %v791_v63 = vadd.f32 %v759_v16, %v595_v61  ;;  %v400_v61 = vmul.f32 %v2126_v23, %v309_v13 }
 0x1fd   :  { %v669_v53 = vpop.permute.xlu1 %668 }
 0x1fe   :  { %v823_v34 = vadd.f32 %v791_v63, %v2682_v60  ;;  %v760_v46 = vmul.f32 %v2158_v48, %v669_v53  ;;  %v2688_v53 = vld [vmem:[#allocation26_spill] sm:$0xff]  ;;  %v432_v13 = vadd.f32 %v400_v61, %v236_v6  ;;  %v1586_v6 = vmov 0.0|0.0  }
 0x1ff   :  { %v418_v15 = vmul.f32 %v2126_v23, %v2688_v53  ;;  %v1111_v61 = vld [vmem:[%s2582_s3 + $0x60] sm:$0xff]  ;;  %1497 = vmatprep.subr.bf16.mxu1 %v1586_v6 }
 0x200   :  { %v792_v35 = vadd.f32 %v760_v46, %v596_v4  ;;  %v1103_v46 = vld [vmem:[%s2582_s3 + $0x20] sm:$0xff]  ;;  %v1112_v4 = vld [vmem:[%s2582_s3 + $0x68] sm:$0xff] }
 0x202   :  { %v1013_v17 = vpop.permute.xlu1 %1012 }
 0x203   :  { %v1062_v29 = vadd.f32 %v1013_v17, %v2422_v12 }
 0x205   :  { %v1094_v58 = vmax.f32 %v1062_v29, 0.0 }
 0x206   :  { %v928_v1 = vpop.permute.xlu1 %927 }
 0x207   :  { %v1485_v42 = vpack.c.bf16 %v1094_v58, %v1093_v31  ;;  %v1045_v2 = vadd.f32 %v928_v1, %v2444_v38  ;;  %v237_v38 = vmul.f32 %v2130_v43, %v2684_v52  ;;  %v824_v58 = vadd.f32 %v792_v35, %v432_v13 }
 0x209   :  { %v1077_v30 = vmax.f32 %v1045_v2, 0.0  ;;  %1486 = vmatprep.subr.bf16.mxu0 %v1485_v42  ;;  %v2689_v42 = vld [vmem:[#allocation27_spill] sm:$0xff] }
 0x20a   :  { %v212_v18 = vpop.permute.xlu1 %211  ;;  %v402_v2 = vmul.f32 %v2126_v23, %v2689_v42 }
 0x20b   :  { %v1487_v5 = vpack.c.bf16 %v1078_v33, %v1077_v30  ;;  %v253_v50 = vmul.f32 %v2130_v43, %v212_v18  ;;  %v450_v30 = vadd.f32 %v418_v15, %v254_v44 }
 0x20d   :  { %1488 = vmatpush3.bf16.msra.mxu0 %v1487_v5  ;;  %v2690_v5 = vld [vmem:[#allocation17_spill] sm:$0xff] }
 0x20f   :  { %v377_v14 = vpop.permute.xlu1 %376 }
 0x210   :  { %v417_v20 = vmul.f32 %v2126_v23, %v377_v14  ;;  %v238_v14 = vmul.f32 %v2130_v43, %v2690_v5 }
 0x212   :  { %v449_v60 = vadd.f32 %v417_v20, %v253_v50  ;;  %v1107_v20 = vld [vmem:[%s2582_s3 + $0x40] sm:$0xff]  ;;  %v1588_v50 = vmov 0.0  }
 0x213   :  { %1462 = vmatprep.mubr.msk.f32.mxu1 %vm1587_vm0, %v1588_v50 }
 0x214   :  { %v573_v36 = vpop.permute.xlu1 %572 }
 0x215   :  { %v613_v55 = vmul.f32 %v2155_v37, %v573_v36 }
 0x217   :  { %v809_v63 = vadd.f32 %v777_v19, %v613_v55  ;;  %v1104_v55 = vld [vmem:[%s2582_s3 + $0x28] sm:$0xff] }
 0x218   :  { %v577_v27 = vpop.permute.xlu1 %576  ;;  %v1108_v19 = vld [vmem:[%s2582_s3 + $0x48] sm:$0xff] }
 0x219   :  { %v841_v17 = vadd.f32 %v809_v63, %v449_v60 }
 0x21b   :  { %v1065_v36 = vadd.f32 %v1028_v24, %v841_v17 }
 0x21d   :  { %v741_v25 = vpop.permute.xlu1 %740  ;;  %v1097_v52 = vmax.f32 %v1065_v36, 0.0 }
 0x21e   :  { %v778_v10 = vmul.f32 %v2158_v48, %v741_v25 }
 0x222   :  { %v313_v62 = vpop.permute.xlu1 %312 }
 0x223   :  { %v401_v12 = vmul.f32 %v2126_v23, %v313_v62 }
 0x225   :  { %v433_v21 = vadd.f32 %v401_v12, %v237_v38  ;;  %v434_v12 = vadd.f32 %v402_v2, %v238_v14 }
 0x227   :  { %v509_v32 = vpop.permute.xlu1 %508 }
 0x228   :  { %v597_v11 = vmul.f32 %v2155_v37, %v509_v32 }
 0x22a   :  { %v793_v26 = vadd.f32 %v761_v0, %v597_v11  ;;  %v948_v0 = vpop.permute.xlu0 %947 }
 0x22b   :  { %v513_v45 = vpop.permute.xlu1 %512 }
 0x22c   :  { %v825_v54 = vadd.f32 %v793_v26, %v433_v21  ;;  %v598_v33 = vmul.f32 %v2155_v37, %v513_v45 }
 0x22e   :  { %v1049_v11 = vadd.f32 %v948_v0, %v825_v54  ;;  %v1101_v54 = vld [vmem:[%s2582_s3 + $0x10] sm:$0xff] }
 0x230   :  { %v677_v40 = vpop.permute.xlu1 %676  ;;  %v1081_v45 = vmax.f32 %v1049_v11, 0.0 }
 0x231   :  { %v762_v3 = vmul.f32 %v2158_v48, %v677_v40  ;;  %v1099_v40 = vld [vmem:[%s2582_s3] sm:$0xff] }
 0x235   :  { %v1018_v9 = vpop.permute.xlu1 %1017 }
 0x236   :  { %v1063_v16 = vadd.f32 %v1018_v9, %v839_v7  ;;  %v614_v7 = vmul.f32 %v2155_v37, %v577_v27  ;;  %v794_v27 = vadd.f32 %v762_v3, %v598_v33  ;;  %v1110_v9 = vld [vmem:[%s2582_s3 + $0x58] sm:$0xff] }
 0x238   :  { %v1095_v8 = vmax.f32 %v1063_v16, 0.0  ;;  %v810_v29 = vadd.f32 %v778_v10, %v614_v7  ;;  %v826_v23 = vadd.f32 %v794_v27, %v434_v12  ;;  %v1114_v16 = vld [vmem:[%s2582_s3 + $0x78] sm:$0xff] }
 0x239   :  { %v938_v49 = vpop.permute.xlu1 %937 }
 0x23a   :  { %v1489_v59 = vpack.c.bf16 %v1096_v41, %v1095_v8  ;;  %v1047_v31 = vadd.f32 %v938_v49, %v823_v34  ;;  %v842_v48 = vadd.f32 %v810_v29, %v450_v30  ;;  %v1126_v41 = vpop.permute.xlu0 %1125 }
 0x23c   :  { %1490 = vmatprep.subr.bf16.mxu0 %v1489_v59  ;;  %v1079_v25 = vmax.f32 %v1047_v31, 0.0 }
 0x23d   :  { %v943_v1 = vpop.permute.xlu1 %942 }
 0x23e   :  { %v1048_v18 = vadd.f32 %v943_v1, %v824_v58  ;;  %v1136_v58 = vpop.permute.xlu0 %1135 }
 0x240   :  { %v1080_v62 = vmax.f32 %v1048_v18, 0.0 }
 0x241   :  { %v1033_v34 = vpop.permute.xlu1 %1032 }
 0x242   :  { %v1491_v32 = vpack.c.bf16 %v1080_v62, %v1079_v25  ;;  %v1066_v56 = vadd.f32 %v1033_v34, %v842_v48  ;;  %v1146_v62 = vpop.permute.xlu0 %1145 }
 0x244   :  { %v1098_v38 = vmax.f32 %v1066_v56, 0.0  ;;  %1492 = vmatpush3.bf16.msra.mxu0 %v1491_v32 }
 0x245   :  { %v953_v37 = vpop.permute.xlu1 %952 }
 0x246   :  { %v1493_v21 = vpack.c.bf16 %v1098_v38, %v1097_v52  ;;  %v1050_v26 = vadd.f32 %v953_v37, %v826_v23 }
 0x248   :  { %v1082_v43 = vmax.f32 %v1050_v26, 0.0  ;;  %1494 = vmatprep.subr.bf16.mxu0 %v1493_v21  ;;  %v1156_v26 = vpop.permute.xlu0 %1155 }
 0x249   :  { %v1131_v49 = vpop.permute.xlu1 %1130 }
 0x24a   :  { %v1495_v51 = vpack.c.bf16 %v1082_v43, %v1081_v45 }
 0x24c   :  { %1496 = vmatpush3.bf16.msra.mxu0 %v1495_v51 }
 0x24d   :  { %v1141_v2 = vpop.permute.xlu1 %1140 }
 0x24f   :  { %1228 = vmatmul.mubr.f32.vlgmr.msra.gmra.mrb[0].mxu0 %v1099_v40 }
 0x250   :  { %1232 = vmatprep.mubr.f32.mxu0 %v1102_v22 }
 0x251   :  { %v1151_v32 = vpop.permute.xlu1 %1150 }
 0x253   :  { %1233 = vmatmul.mubr.f32.gmra.mrb[2].mxu0 %v1101_v54 }
 0x254   :  { %1237 = vmatprep.mubr.f32.mxu0 %v1104_v55 }
 0x255   :  { %v1161_v40 = vpop.permute.xlu1 %1160 }
 0x257   :  { %1238 = vmatmul.mubr.f32.gmra.mrb[4].mxu0 %v1103_v46 }
 0x258   :  { %1242 = vmatprep.mubr.f32.mxu0 %v1106_v28  ;;  %v1276_v28 = vld [vmem:[%s2583_s5] sm:$0xff] }
 0x25b   :  { %1243 = vmatmul.mubr.f32.gmra.mrb[6].mxu0 %v1105_v47  ;;  %v1281_v47 = vpop.permute.xlu0 %1280 }
 0x25c   :  { %1247 = vmatprep.mubr.f32.mxu0 %v1108_v19 }
 0x25f   :  { %1248 = vmatmul.mubr.f32.gmra.mrb[8].mxu0 %v1107_v20 }
 0x260   :  { %1252 = vmatprep.mubr.f32.mxu0 %v1110_v9 }
 0x263   :  { %1253 = vmatmul.mubr.f32.gmra.mrb[10].mxu0 %v1109_v57 }
 0x264   :  { %1257 = vmatprep.mubr.f32.mxu0 %v1112_v4 }
 0x267   :  { %1258 = vmatmul.mubr.f32.gmra.mrb[12].mxu0 %v1111_v61 }
 0x268   :  { %1262 = vmatprep.mubr.f32.mxu0 %v1114_v16 }
 0x26b   :  { %1263 = vmatmul.mubr.f32.gmra.mrb[14].mxu0 %v1113_v39 }
 0x322   :  { %v1413_v63 = vpop.f32.mrb[0].mxu0 }
 0x323   :  { %v1414_v35 = vpop.f32.mrb[1].mxu0 }
 0x324   :  { %v1415_v10 = vadd.f32 %v1414_v35, %v1413_v63 }
 0x326   :  { %v1416_v8 = vpop.f32.mrb[2].mxu0  ;;  %v1230_v15 = vadd.f32 %v1415_v10, %v1126_v41 }
 0x327   :  { %v1417_v53 = vpop.f32.mrb[3].mxu0 }
 0x328   :  { %v1418_v60 = vadd.f32 %v1417_v53, %v1416_v8  ;;  %v1268_v59 = vmax.f32 %v1230_v15, 0.0  ;;  %v2691_v8 = vld [vmem:[#allocation34_spill] sm:$0xff] }
 0x329   :  { %vm1373_vm3 = vcmp.lt.s32.totalorder %v2691_v8, 3 }
 0x32a   :  { %v1235_v44 = vadd.f32 %v1418_v60, %v1131_v49  ;;  %v1419_v13 = vpop.f32.mrb[4].mxu0 }
 0x32b   :  { %v1420_v7 = vpop.f32.mrb[5].mxu0 }
 0x32c   :  { %v1269_v17 = vmax.f32 %v1235_v44, 0.0  ;;  %v1421_v29 = vadd.f32 %v1420_v7, %v1419_v13 }
 0x32e   :  { %v1422_v3 = vpop.f32.mrb[6].mxu0  ;;  %v1498_v31 = vpack.c.bf16 %v1269_v17, %v1268_v59  ;;  %v1240_v1 = vadd.f32 %v1421_v29, %v1136_v58 }
 0x32f   :  { %v1423_v24 = vpop.f32.mrb[7].mxu0 }
 0x330   :  { %v1424_v42 = vadd.f32 %v1423_v24, %v1422_v3  ;;  %1499 = vmatpush3.bf16.msra.mxu1 %v1498_v31  ;;  %v1270_v5 = vmax.f32 %v1240_v1, 0.0 }
 0x331   :  { %1500 = vmatprep.subr.bf16.mxu1 %v1586_v6 }
 0x332   :  { %v1245_v30 = vadd.f32 %v1424_v42, %v1141_v2  ;;  %v1425_v33 = vpop.f32.mrb[8].mxu0 }
 0x333   :  { %v1426_v18 = vpop.f32.mrb[9].mxu0 }
 0x334   :  { %v1271_v14 = vmax.f32 %v1245_v30, 0.0  ;;  %v1427_v36 = vadd.f32 %v1426_v18, %v1425_v33 }
 0x336   :  { %v1428_v27 = vpop.f32.mrb[10].mxu0  ;;  %v1501_v25 = vpack.c.bf16 %v1271_v14, %v1270_v5  ;;  %v1250_v34 = vadd.f32 %v1427_v36, %v1146_v62 }
 0x337   :  { %v1429_v48 = vpop.f32.mrb[11].mxu0 }
 0x338   :  { %v1430_v12 = vadd.f32 %v1429_v48, %v1428_v27  ;;  %1502 = vmatpush3.bf16.msra.mxu1 %v1501_v25  ;;  %v1272_v38 = vmax.f32 %v1250_v34, 0.0 }
 0x339   :  { %1503 = vmatprep.subr.bf16.mxu1 %v1586_v6 }
 0x33a   :  { %v1255_v56 = vadd.f32 %v1430_v12, %v1151_v32  ;;  %v1431_v0 = vpop.f32.mrb[12].mxu0 }
 0x33b   :  { %v1432_v52 = vpop.f32.mrb[13].mxu0 }
 0x33c   :  { %v1273_v23 = vmax.f32 %v1255_v56, 0.0  ;;  %v1433_v11 = vadd.f32 %v1432_v52, %v1431_v0 }
 0x33e   :  { %v1434_v37 = vpop.f32.mrb[14].mxu0  ;;  %v1504_v21 = vpack.c.bf16 %v1273_v23, %v1272_v38  ;;  %v1260_v43 = vadd.f32 %v1433_v11, %v1156_v26 }
 0x33f   :  { %v1435_v45 = vpop.f32.mrb[15].mxu0 }
 0x340   :  { %v1436_v51 = vadd.f32 %v1435_v45, %v1434_v37  ;;  %1505 = vmatpush3.bf16.msra.mxu1 %v1504_v21  ;;  %v1274_v54 = vmax.f32 %v1260_v43, 0.0 }
 0x341   :  { %1506 = vmatprep.subr.bf16.mxu1 %v1586_v6 }
 0x342   :  { %v1265_v22 = vadd.f32 %v1436_v51, %v1161_v40 }
 0x344   :  { %v1275_v55 = vmax.f32 %v1265_v22, 0.0 }
 0x346   :  { %v1507_v46 = vpack.c.bf16 %v1275_v55, %v1274_v54 }
 0x348   :  { %1508 = vmatpush3.bf16.msra.mxu1 %v1507_v46 }
 0x34b   :  { %1463 = vmatmul.mubr.msk.f32.vlgmr.msra.gmra.mrb[0].mxu1 %vm1283_vm1, %v1276_v28 }
 0x41e   :  { %v1353_v19 = vpop.f32.mrb[0].mxu1 }
 0x41f   :  { %v1354_v20 = vadd.f32 %v1353_v19, %v1281_v47  ;;  %v1464_v9 = vpop.f32.mrb[1].mxu1 }
 0x421   :  { %v1359_v57 = vmin.f32 %v1354_v20, 20.0  ;;  %vm1360_vm4 = vcmp.gt.f32.partialorder %v1354_v20, 20.0 }
 0x423   :  { %v1361_v4 = vmul.f32 1.442695, %v1359_v57 }
 0x425   :  { %1577 = vpow2.f32 %v1361_v4 }
 0x42f   :  { %v1578_v61 = vpop.eup %1577 }
 0x430   :  { %v1363_v16 = vadd.f32 1.0, %v1578_v61  ;;  %v1366_v39 = vmul.f32 -0.5, %v1578_v61  ;;  %v1369_v50 = vand.u32 2147483647, %v1578_v61 }
 0x432   :  { %1579 = vlog2.f32 %v1363_v16  ;;  %v1367_v6 = vadd.f32 1.0, %v1366_v39  ;;  %vm1370_vm2 = vcmp.lt.f32.partialorder %v1369_v50, 0.0004427343 }
 0x434   :  { %v1368_v10 = vmul.f32 %v1578_v61, %v1367_v6 }
 0x43c   :  { %v1580_v63 = vpop.eup %1579 }
 0x43d   :  { %v1365_v35 = vmul.f32 0.6931472, %v1580_v63 }
 0x43f   :  { %v1371_v41 = vsel %vm1370_vm2, %v1368_v10, %v1365_v35 }
 0x440   :  { %v1372_v53 = vsel %vm1360_vm4, %v1354_v20, %v1371_v41 }
 0x441   :  { %v1374_v15 = vsel %vm1373_vm3, %v1354_v20, %v1372_v53 }
 0x442   :  { %1375 = vst [vmem:[%s2584_s7] sm:$0xff] %v1374_v15 }

</bundles_post_ra>
